<compile_context>
chip_gen: v5e
topology: v5e:2x2
jax: 0.10.0
libtpu: 0.0.40
codegen_flags: <defaults>
</compile_context>

<pallas_src>
import functools

import jax
import jax.numpy as jnp
from jax import lax
from jax.experimental import pallas as pl
from jax.experimental.pallas import tpu as pltpu


T_TILE = 32   # timesteps per grid step (clamped to the padded sequence length)
UNROLL = 8    # bounded unroll of the serial recurrence inside a tile


def _round_up(x, m):
    return ((x + m - 1) // m) * m


def _pad_gate_major(w, H, H_pad):
    """w: (..., 4*H), PyTorch gate order (i,f,g,o) packed along the last axis.
    Returns (..., 4*H_pad) with each gate block zero-padded from H to H_pad lanes,
    so gate k occupies lane-aligned columns [k*H_pad, k*H_pad + H)."""
    parts = []
    for k in range(4):
        g = w[..., k * H:(k + 1) * H]
        pad = [(0, 0)] * (w.ndim - 1) + [(0, H_pad - H)]
        parts.append(jnp.pad(g, pad))
    return jnp.concatenate(parts, axis=-1)


def _sigmoid(x):
    # Exact sigmoid via tanh: one EUP op + trivial VPU FMA (vs exp + divide).
    return 0.5 * jnp.tanh(0.5 * x) + 0.5


def lstm_lm_kernel(emb_ref, w_ih_ref, w_hh_ref, b_ref, w_out_ref, b_out_ref,
                   out_ref, h_ref, c_ref, hs_ref, gin_ref, *, unroll):
    # emb_ref : (T_tile*Bp, Ep)    time-major slab for this tile (f32 or bf16)
    # w_ih    : (Ep, 4*Hp)   w_hh : (Hp, 4*Hp)   b : (1, 4*Hp)   [gate-major, padded]
    # w_out   : (Hp, Vp)     b_out: (1, Vp)
    # out_ref : (T_tile*Bp, Vp)  f32
    # scratch : h (Bp,Hp), c (Bp,Hp), hs (T_tile*Bp, Hp), gin (T_tile*Bp, 4*Hp)  all f32
    Bp, Hp = h_ref.shape
    rows = emb_ref.shape[0]
    Tt = rows // Bp
    cdt = w_hh_ref.dtype  # MXU compute dtype (f32 or bf16)

    @pl.when(pl.program_id(0) == 0)
    def _init():
        h_ref[...] = jnp.zeros_like(h_ref)
        c_ref[...] = jnp.zeros_like(c_ref)

    # ---- Phase 1: batched input projection for the whole tile (one MXU matmul). ----
    gin_ref[...] = (jnp.dot(emb_ref[...], w_ih_ref[...],
                            preferred_element_type=jnp.float32)
                    + b_ref[...])

    # ---- Phase 2: serial recurrence; only h @ W_hh + gate math on the critical path. -
    def step(t, carry):
        h, c = carry
        row = pl.multiple_of(t * Bp, Bp)
        gates = gin_ref[pl.ds(row, Bp), :] + jnp.dot(
            h.astype(cdt), w_hh_ref[...],
            preferred_element_type=jnp.float32)                   # (Bp, 4*Hp)
        # Gate slices are lane-aligned (Hp is a multiple of 128).
        i = _sigmoid(gates[:, 0 * Hp:1 * Hp])
        f = _sigmoid(gates[:, 1 * Hp:2 * Hp])
        g = jnp.tanh(gates[:, 2 * Hp:3 * Hp])
        o = _sigmoid(gates[:, 3 * Hp:4 * Hp])
        c_new = f * c + i * g
        h_new = o * jnp.tanh(c_new)
        hs_ref[pl.ds(row, Bp), :] = h_new
        return (h_new, c_new)

    h_fin, c_fin = lax.fori_loop(0, Tt, step, (h_ref[...], c_ref[...]),
                                 unroll=min(unroll, Tt))
    h_ref[...] = h_fin
    c_ref[...] = c_fin

    # ---- Phase 3: batched output projection, single lane-dense slab store. ----
    out_ref[...] = (jnp.dot(hs_ref[...].astype(cdt), w_out_ref[...],
                            preferred_element_type=jnp.float32)
                    + b_out_ref[...]).astype(out_ref.dtype)


def lm_lstm_forward(tokens, params, *, t_tile=T_TILE, use_bf16=False):
    """tokens: (B, T) int32. Returns (B, V, T) float32 logits (PyTorch semantics)."""
    w_emb = params["w_emb"]   # (V, E)
    w_ih = params["w_ih"]     # (E, 4H)
    w_hh = params["w_hh"]     # (H, 4H)
    b = params["b"]           # (1, 4H)  (b_ih + b_hh)
    w_out = params["w_out"]   # (H, V)
    b_out = params["b_out"]   # (1, V)

    B, T = tokens.shape
    V, E = w_emb.shape
    H = w_hh.shape[0]

    # Hardware-friendly padded sizes: lane dims -> multiples of 128, batch -> sublane 8.
    Ep = _round_up(E, 128)
    Hp = _round_up(H, 128)
    Vp = _round_up(V, 128)
    Bp = _round_up(B, 8)
    t_tile = max(1, min(t_tile, _round_up(T, 8)))   # don't over-pad tiny sequences
    Tp = _round_up(T, t_tile)
    f32 = jnp.float32
    cdt = jnp.bfloat16 if use_bf16 else f32         # MXU operand dtype

    # Weights: pad + gate-major lane-aligned layout (done once, outside the kernel).
    w_ih_p = _pad_gate_major(jnp.pad(w_ih, ((0, Ep - E), (0, 0))), H, Hp).astype(cdt)
    w_hh_p = _pad_gate_major(jnp.pad(w_hh, ((0, Hp - H), (0, 0))), H, Hp).astype(cdt)
    b_p = _pad_gate_major(b, H, Hp).astype(f32)                         # (1, 4Hp)
    w_out_p = jnp.pad(w_out, ((0, Hp - H), (0, Vp - V))).astype(cdt)    # (Hp, Vp)
    b_out_p = jnp.pad(b_out, ((0, 0), (0, Vp - V))).astype(f32)         # (1, Vp)

    # Embedding gather directly in time-major order (no activation transpose).
    # (In-kernel DMA gather of embedding rows is a further optimization not applied.)
    w_emb_p = jnp.pad(w_emb, ((0, 0), (0, Ep - E))).astype(cdt)         # (V, Ep)
    emb_tm = w_emb_p[tokens.T]                                          # (T, B, Ep)
    emb_tm = jnp.pad(emb_tm, ((0, Tp - T), (0, Bp - B), (0, 0)))
    emb_slab = emb_tm.reshape(Tp * Bp, Ep)                              # contiguous

    rows_per_tile = t_tile * Bp
    grid = (Tp // t_tile,)

    kernel = functools.partial(lstm_lm_kernel, unroll=UNROLL)

    out_slab = pl.pallas_call(
        kernel,
        out_shape=jax.ShapeDtypeStruct((Tp * Bp, Vp), f32),
        grid_spec=pltpu.PrefetchScalarGridSpec(
            num_scalar_prefetch=0,
            grid=grid,
            in_specs=[
                pl.BlockSpec((rows_per_tile, Ep), lambda t: (t, 0)),  # emb tile (streamed)
                pl.BlockSpec((Ep, 4 * Hp), lambda t: (0, 0)),         # W_ih (resident)
                pl.BlockSpec((Hp, 4 * Hp), lambda t: (0, 0)),         # W_hh (resident)
                pl.BlockSpec((1, 4 * Hp), lambda t: (0, 0)),          # bias
                pl.BlockSpec((Hp, Vp), lambda t: (0, 0)),             # W_out (resident)
                pl.BlockSpec((1, Vp), lambda t: (0, 0)),              # b_out
            ],
            out_specs=pl.BlockSpec((rows_per_tile, Vp), lambda t: (t, 0)),
            scratch_shapes=[
                pltpu.VMEM((Bp, Hp), f32),                    # h carry (persists across tiles)
                pltpu.VMEM((Bp, Hp), f32),                    # c carry
                pltpu.VMEM((rows_per_tile, Hp), f32),         # per-tile hidden-state slab
                pltpu.VMEM((rows_per_tile, 4 * Hp), f32),     # per-tile gate pre-activations
            ],
        ),
        compiler_params=pltpu.CompilerParams(
            dimension_semantics=("arbitrary",),   # sequential: h/c carried across T tiles
            vmem_limit_bytes=48 * 1024 * 1024,    # headroom on v7x (64 MiB physical)
        ),
    )(emb_slab, w_ih_p, w_hh_p, b_p, w_out_p, b_out_p)

    # Trim padding, then (T, B, V) -> (B, V, T)  == PyTorch output.permute(0, 2, 1).
    logits_tm = out_slab.reshape(Tp, Bp, Vp)[:T, :B, :V]
    return jnp.transpose(logits_tm, (1, 2, 0))


def make_params(key, emb_size, hidden_size, output_size, pad_index=0):
    k = jax.random.split(key, 6)
    scale = 0.1
    w_emb = scale * jax.random.normal(k[0], (output_size, emb_size), jnp.float32)
    w_emb = w_emb.at[pad_index].set(0.0)   # nn.Embedding(padding_idx=...) row zeroed
    w_ih = scale * jax.random.normal(k[1], (emb_size, 4 * hidden_size), jnp.float32)
    w_hh = scale * jax.random.normal(k[2], (hidden_size, 4 * hidden_size), jnp.float32)
    b_ih = scale * jax.random.normal(k[3], (4 * hidden_size,), jnp.float32)
    b_hh = scale * jax.random.normal(k[4], (4 * hidden_size,), jnp.float32)
    w_out = scale * jax.random.normal(k[5], (hidden_size, output_size), jnp.float32)
    b_out = jnp.zeros((output_size,), jnp.float32)
    return {
        "w_emb": w_emb,
        "w_ih": w_ih,
        "w_hh": w_hh,
        "b": (b_ih + b_hh)[None, :],
        "w_out": w_out,
        "b_out": b_out[None, :],
    }


def reference_forward(tokens, params):
    """Pure-JAX reference mirroring PyTorch LM_LSTM.forward (gate order i,f,g,o)."""
    w_emb, w_ih, w_hh, b = params["w_emb"], params["w_ih"], params["w_hh"], params["b"]
    w_out, b_out = params["w_out"], params["b_out"]
    H = w_hh.shape[0]
    emb = w_emb[tokens]                    # (B, T, E)
    B, T, E = emb.shape

    def cell(carry, x_t):
        h, c = carry
        gates = x_t @ w_ih + h @ w_hh + b
        i = jax.nn.sigmoid(gates[:, 0 * H:1 * H])
        f = jax.nn.sigmoid(gates[:, 1 * H:2 * H])
        g = jnp.tanh(gates[:, 2 * H:3 * H])
        o = jax.nn.sigmoid(gates[:, 3 * H:4 * H])
        c = f * c + i * g
        h = o * jnp.tanh(c)
        return (h, c), h

    h0 = jnp.zeros((B, H), jnp.float32)
    c0 = jnp.zeros((B, H), jnp.float32)
    _, hs = lax.scan(cell, (h0, c0), jnp.transpose(emb, (1, 0, 2)))  # (T, B, H)
    rnn_out = jnp.transpose(hs, (1, 0, 2))                           # (B, T, H)
    logits = rnn_out @ w_out + b_out                                 # (B, T, V)
    return jnp.transpose(logits, (0, 2, 1))                          # (B, V, T)


if __name__ == "__main__":
    emb_size = 32
    hidden_size = 32
    output_size = 64   # vocab
    B, T = 2, 8

    key = jax.random.PRNGKey(0)
    kp, kt = jax.random.split(key)
    params = make_params(kp, emb_size, hidden_size, output_size, pad_index=0)
    tokens = jax.random.randint(kt, (B, T), 0, output_size, dtype=jnp.int32)

    ref = jax.block_until_ready(reference_forward(tokens, params))

    # Exact-parity f32 path.
    out = jax.block_until_ready(jax.jit(lm_lstm_forward)(tokens, params))
    assert out.shape == (B, output_size, T), out.shape
    err = float(jnp.max(jnp.abs(out - ref)))
    assert err < 1e-3, err

    # bf16 MXU-operand path (f32 accumulation / carries) — looser tolerance.
    out_bf16 = jax.block_until_ready(
        jax.jit(functools.partial(lm_lstm_forward, use_bf16=True))(tokens, params))
    err_bf16 = float(jnp.max(jnp.abs(out_bf16 - ref)))
    assert err_bf16 < 5e-2, err_bf16

    print("KERNEL_OK")
</pallas_src>

<mosaic_0001>
module attributes {stable_mosaic.version = 11 : i64} {
  func.func @lstm_lm_kernel(%arg0: i32, %arg1: memref<64x128xf32, #tpu.memory_space<vmem>>, %arg2: memref<128x512xf32, #tpu.memory_space<vmem>>, %arg3: memref<128x512xf32, #tpu.memory_space<vmem>>, %arg4: memref<1x512xf32, #tpu.memory_space<vmem>>, %arg5: memref<128x128xf32, #tpu.memory_space<vmem>>, %arg6: memref<1x128xf32, #tpu.memory_space<vmem>>, %arg7: memref<64x128xf32, #tpu.memory_space<vmem>>, %arg8: memref<8x128xf32, #tpu.memory_space<vmem>>, %arg9: memref<8x128xf32, #tpu.memory_space<vmem>>, %arg10: memref<64x128xf32, #tpu.memory_space<vmem>>, %arg11: memref<64x512xf32, #tpu.memory_space<vmem>>) attributes {dimension_semantics = [#tpu.dimension_semantics<arbitrary>], iteration_bounds = array<i64: 1>, scalar_prefetch = 0 : i64, scratch_operands = 4 : i64, tpu.core_type = #tpu.core_type<tc>, window_params = [{transform_indices = @transform_0, window_bounds = array<i64: 64, 128>}, {pipeline_mode = #tpu.pipeline_mode<synchronous>, transform_indices = @transform_1, window_bounds = array<i64: 128, 512>}, {pipeline_mode = #tpu.pipeline_mode<synchronous>, transform_indices = @transform_2, window_bounds = array<i64: 128, 512>}, {pipeline_mode = #tpu.pipeline_mode<synchronous>, transform_indices = @transform_3, window_bounds = array<i64: 1, 512>}, {pipeline_mode = #tpu.pipeline_mode<synchronous>, transform_indices = @transform_4, window_bounds = array<i64: 128, 128>}, {pipeline_mode = #tpu.pipeline_mode<synchronous>, transform_indices = @transform_5, window_bounds = array<i64: 1, 128>}, {transform_indices = @transform_6, window_bounds = array<i64: 64, 128>}]} {
    %c0_i32 = arith.constant 0 : i32
    %0 = arith.cmpi eq, %arg0, %c0_i32 : i32
    %1 = arith.extui %0 : i1 to i32
    %c0_i32_0 = arith.constant 0 : i32
    %2 = arith.cmpi ne, %1, %c0_i32_0 : i32
    scf.if %2 {
      %cst_146 = arith.constant 0.000000e+00 : f32
      %341 = vector.broadcast %cst_146 : f32 to vector<8x128xf32>
      %c0_147 = arith.constant 0 : index
      %c0_148 = arith.constant 0 : index
      %342 = vector.load %arg8[%c0_147, %c0_148] : memref<8x128xf32, #tpu.memory_space<vmem>>, vector<8x128xf32>
      tpu.vector_store %arg8[%c0_147, %c0_148], %341 {strides = array<i32>} : memref<8x128xf32, #tpu.memory_space<vmem>>, vector<8x128xf32>,
      %cst_149 = arith.constant 0.000000e+00 : f32
      %343 = vector.broadcast %cst_149 : f32 to vector<8x128xf32>
      %c0_150 = arith.constant 0 : index
      %c0_151 = arith.constant 0 : index
      %344 = vector.load %arg9[%c0_150, %c0_151] : memref<8x128xf32, #tpu.memory_space<vmem>>, vector<8x128xf32>
      tpu.vector_store %arg9[%c0_150, %c0_151], %343 {strides = array<i32>} : memref<8x128xf32, #tpu.memory_space<vmem>>, vector<8x128xf32>,
    } else {
    }
    %c0 = arith.constant 0 : index
    %c0_1 = arith.constant 0 : index
    %3 = vector.load %arg1[%c0, %c0_1] : memref<64x128xf32, #tpu.memory_space<vmem>>, vector<64x128xf32>
    %c0_2 = arith.constant 0 : index
    %c0_3 = arith.constant 0 : index
    %4 = vector.load %arg2[%c0_2, %c0_3] : memref<128x512xf32, #tpu.memory_space<vmem>>, vector<128x512xf32>
    %cst = arith.constant dense<0.000000e+00> : vector<64x512xf32>
    %5 = tpu.matmul %3, %4, %cst {dimension_numbers = #tpu.dot_dimension_numbers<[1], [0], [0], [1], [0, 0, 1, 1], [], []>} : vector<64x128xf32>, vector<128x512xf32>, vector<64x512xf32> -> vector<64x512xf32>
    %c0_4 = arith.constant 0 : index
    %c0_5 = arith.constant 0 : index
    %6 = vector.load %arg4[%c0_4, %c0_5] : memref<1x512xf32, #tpu.memory_space<vmem>>, vector<1x512xf32>
    %7 = vector.broadcast %6 : vector<1x512xf32> to vector<64x512xf32>
    %8 = arith.addf %5, %7 : vector<64x512xf32>
    %c0_6 = arith.constant 0 : index
    %c0_7 = arith.constant 0 : index
    %9 = vector.load %arg11[%c0_6, %c0_7] : memref<64x512xf32, #tpu.memory_space<vmem>>, vector<64x512xf32>
    tpu.vector_store %arg11[%c0_6, %c0_7], %8 {strides = array<i32>} : memref<64x512xf32, #tpu.memory_space<vmem>>, vector<64x512xf32>,
    %c0_8 = arith.constant 0 : index
    %c0_9 = arith.constant 0 : index
    %10 = vector.load %arg8[%c0_8, %c0_9] : memref<8x128xf32, #tpu.memory_space<vmem>>, vector<8x128xf32>
    %c0_10 = arith.constant 0 : index
    %c0_11 = arith.constant 0 : index
    %11 = vector.load %arg9[%c0_10, %c0_11] : memref<8x128xf32, #tpu.memory_space<vmem>>, vector<8x128xf32>
    %c0_i32_12 = arith.constant 0 : i32
    %c8_i32 = arith.constant 8 : i32
    %12 = arith.muli %c0_i32_12, %c8_i32 : i32
    %13 = tpu.assume_multiple %12, 8 : i32
    %14 = arith.index_cast %13 : i32 to index
    %c0_13 = arith.constant 0 : index
    %15 = vector.load %arg11[%14, %c0_13] : memref<64x512xf32, #tpu.memory_space<vmem>>, vector<8x512xf32>
    %c0_14 = arith.constant 0 : index
    %c0_15 = arith.constant 0 : index
    %16 = vector.load %arg3[%c0_14, %c0_15] : memref<128x512xf32, #tpu.memory_space<vmem>>, vector<128x512xf32>
    %cst_16 = arith.constant dense<0.000000e+00> : vector<8x512xf32>
    %17 = tpu.matmul %10, %16, %cst_16 {dimension_numbers = #tpu.dot_dimension_numbers<[1], [0], [0], [1], [0, 0, 1, 1], [], []>} : vector<8x128xf32>, vector<128x512xf32>, vector<8x512xf32> -> vector<8x512xf32>
    %18 = arith.addf %15, %17 : vector<8x512xf32>
    %19 = vector.extract_strided_slice %18 {offsets = [0, 0], sizes = [8, 128], strides = [1, 1]} : vector<8x512xf32> to vector<8x128xf32>
    %cst_17 = arith.constant 5.000000e-01 : f32
    %20 = vector.broadcast %cst_17 : f32 to vector<8x128xf32>
    %21 = arith.mulf %20, %19 : vector<8x128xf32>
    %22 = math.tanh %21 : vector<8x128xf32>
    %cst_18 = arith.constant 5.000000e-01 : f32
    %23 = vector.broadcast %cst_18 : f32 to vector<8x128xf32>
    %24 = arith.mulf %23, %22 : vector<8x128xf32>
    %cst_19 = arith.constant 5.000000e-01 : f32
    %25 = vector.broadcast %cst_19 : f32 to vector<8x128xf32>
    %26 = arith.addf %24, %25 : vector<8x128xf32>
    %27 = vector.extract_strided_slice %18 {offsets = [0, 128], sizes = [8, 128], strides = [1, 1]} : vector<8x512xf32> to vector<8x128xf32>
    %cst_20 = arith.constant 5.000000e-01 : f32
    %28 = vector.broadcast %cst_20 : f32 to vector<8x128xf32>
    %29 = arith.mulf %28, %27 : vector<8x128xf32>
    %30 = math.tanh %29 : vector<8x128xf32>
    %cst_21 = arith.constant 5.000000e-01 : f32
    %31 = vector.broadcast %cst_21 : f32 to vector<8x128xf32>
    %32 = arith.mulf %31, %30 : vector<8x128xf32>
    %cst_22 = arith.constant 5.000000e-01 : f32
    %33 = vector.broadcast %cst_22 : f32 to vector<8x128xf32>
    %34 = arith.addf %32, %33 : vector<8x128xf32>
    %35 = vector.extract_strided_slice %18 {offsets = [0, 256], sizes = [8, 128], strides = [1, 1]} : vector<8x512xf32> to vector<8x128xf32>
    %36 = math.tanh %35 : vector<8x128xf32>
    %37 = vector.extract_strided_slice %18 {offsets = [0, 384], sizes = [8, 128], strides = [1, 1]} : vector<8x512xf32> to vector<8x128xf32>
    %cst_23 = arith.constant 5.000000e-01 : f32
    %38 = vector.broadcast %cst_23 : f32 to vector<8x128xf32>
    %39 = arith.mulf %38, %37 : vector<8x128xf32>
    %40 = math.tanh %39 : vector<8x128xf32>
    %cst_24 = arith.constant 5.000000e-01 : f32
    %41 = vector.broadcast %cst_24 : f32 to vector<8x128xf32>
    %42 = arith.mulf %41, %40 : vector<8x128xf32>
    %cst_25 = arith.constant 5.000000e-01 : f32
    %43 = vector.broadcast %cst_25 : f32 to vector<8x128xf32>
    %44 = arith.addf %42, %43 : vector<8x128xf32>
    %45 = arith.mulf %34, %11 : vector<8x128xf32>
    %46 = arith.mulf %26, %36 : vector<8x128xf32>
    %47 = arith.addf %45, %46 : vector<8x128xf32>
    %48 = math.tanh %47 : vector<8x128xf32>
    %49 = arith.mulf %44, %48 : vector<8x128xf32>
    %50 = arith.index_cast %13 : i32 to index
    %c0_26 = arith.constant 0 : index
    %51 = vector.load %arg10[%50, %c0_26] : memref<64x128xf32, #tpu.memory_space<vmem>>, vector<8x128xf32>
    tpu.vector_store %arg10[%50, %c0_26], %49 {strides = array<i32>} : memref<64x128xf32, #tpu.memory_space<vmem>>, vector<8x128xf32>,
    %c1_i32 = arith.constant 1 : i32
    %c8_i32_27 = arith.constant 8 : i32
    %52 = arith.muli %c1_i32, %c8_i32_27 : i32
    %53 = tpu.assume_multiple %52, 8 : i32
    %54 = arith.index_cast %53 : i32 to index
    %c0_28 = arith.constant 0 : index
    %55 = vector.load %arg11[%54, %c0_28] : memref<64x512xf32, #tpu.memory_space<vmem>>, vector<8x512xf32>
    %c0_29 = arith.constant 0 : index
    %c0_30 = arith.constant 0 : index
    %56 = vector.load %arg3[%c0_29, %c0_30] : memref<128x512xf32, #tpu.memory_space<vmem>>, vector<128x512xf32>
    %cst_31 = arith.constant dense<0.000000e+00> : vector<8x512xf32>
    %57 = tpu.matmul %49, %56, %cst_31 {dimension_numbers = #tpu.dot_dimension_numbers<[1], [0], [0], [1], [0, 0, 1, 1], [], []>} : vector<8x128xf32>, vector<128x512xf32>, vector<8x512xf32> -> vector<8x512xf32>
    %58 = arith.addf %55, %57 : vector<8x512xf32>
    %59 = vector.extract_strided_slice %58 {offsets = [0, 0], sizes = [8, 128], strides = [1, 1]} : vector<8x512xf32> to vector<8x128xf32>
    %cst_32 = arith.constant 5.000000e-01 : f32
    %60 = vector.broadcast %cst_32 : f32 to vector<8x128xf32>
    %61 = arith.mulf %60, %59 : vector<8x128xf32>
    %62 = math.tanh %61 : vector<8x128xf32>
    %cst_33 = arith.constant 5.000000e-01 : f32
    %63 = vector.broadcast %cst_33 : f32 to vector<8x128xf32>
    %64 = arith.mulf %63, %62 : vector<8x128xf32>
    %cst_34 = arith.constant 5.000000e-01 : f32
    %65 = vector.broadcast %cst_34 : f32 to vector<8x128xf32>
    %66 = arith.addf %64, %65 : vector<8x128xf32>
    %67 = vector.extract_strided_slice %58 {offsets = [0, 128], sizes = [8, 128], strides = [1, 1]} : vector<8x512xf32> to vector<8x128xf32>
    %cst_35 = arith.constant 5.000000e-01 : f32
    %68 = vector.broadcast %cst_35 : f32 to vector<8x128xf32>
    %69 = arith.mulf %68, %67 : vector<8x128xf32>
    %70 = math.tanh %69 : vector<8x128xf32>
    %cst_36 = arith.constant 5.000000e-01 : f32
    %71 = vector.broadcast %cst_36 : f32 to vector<8x128xf32>
    %72 = arith.mulf %71, %70 : vector<8x128xf32>
    %cst_37 = arith.constant 5.000000e-01 : f32
    %73 = vector.broadcast %cst_37 : f32 to vector<8x128xf32>
    %74 = arith.addf %72, %73 : vector<8x128xf32>
    %75 = vector.extract_strided_slice %58 {offsets = [0, 256], sizes = [8, 128], strides = [1, 1]} : vector<8x512xf32> to vector<8x128xf32>
    %76 = math.tanh %75 : vector<8x128xf32>
    %77 = vector.extract_strided_slice %58 {offsets = [0, 384], sizes = [8, 128], strides = [1, 1]} : vector<8x512xf32> to vector<8x128xf32>
    %cst_38 = arith.constant 5.000000e-01 : f32
    %78 = vector.broadcast %cst_38 : f32 to vector<8x128xf32>
    %79 = arith.mulf %78, %77 : vector<8x128xf32>
    %80 = math.tanh %79 : vector<8x128xf32>
    %cst_39 = arith.constant 5.000000e-01 : f32
    %81 = vector.broadcast %cst_39 : f32 to vector<8x128xf32>
    %82 = arith.mulf %81, %80 : vector<8x128xf32>
    %cst_40 = arith.constant 5.000000e-01 : f32
    %83 = vector.broadcast %cst_40 : f32 to vector<8x128xf32>
    %84 = arith.addf %82, %83 : vector<8x128xf32>
    %85 = arith.mulf %74, %47 : vector<8x128xf32>
    %86 = arith.mulf %66, %76 : vector<8x128xf32>
    %87 = arith.addf %85, %86 : vector<8x128xf32>
    %88 = math.tanh %87 : vector<8x128xf32>
    %89 = arith.mulf %84, %88 : vector<8x128xf32>
    %90 = arith.index_cast %53 : i32 to index
    %c0_41 = arith.constant 0 : index
    %91 = vector.load %arg10[%90, %c0_41] : memref<64x128xf32, #tpu.memory_space<vmem>>, vector<8x128xf32>
    tpu.vector_store %arg10[%90, %c0_41], %89 {strides = array<i32>} : memref<64x128xf32, #tpu.memory_space<vmem>>, vector<8x128xf32>,
    %c2_i32 = arith.constant 2 : i32
    %c8_i32_42 = arith.constant 8 : i32
    %92 = arith.muli %c2_i32, %c8_i32_42 : i32
    %93 = tpu.assume_multiple %92, 8 : i32
    %94 = arith.index_cast %93 : i32 to index
    %c0_43 = arith.constant 0 : index
    %95 = vector.load %arg11[%94, %c0_43] : memref<64x512xf32, #tpu.memory_space<vmem>>, vector<8x512xf32>
    %c0_44 = arith.constant 0 : index
    %c0_45 = arith.constant 0 : index
    %96 = vector.load %arg3[%c0_44, %c0_45] : memref<128x512xf32, #tpu.memory_space<vmem>>, vector<128x512xf32>
    %cst_46 = arith.constant dense<0.000000e+00> : vector<8x512xf32>
    %97 = tpu.matmul %89, %96, %cst_46 {dimension_numbers = #tpu.dot_dimension_numbers<[1], [0], [0], [1], [0, 0, 1, 1], [], []>} : vector<8x128xf32>, vector<128x512xf32>, vector<8x512xf32> -> vector<8x512xf32>
    %98 = arith.addf %95, %97 : vector<8x512xf32>
    %99 = vector.extract_strided_slice %98 {offsets = [0, 0], sizes = [8, 128], strides = [1, 1]} : vector<8x512xf32> to vector<8x128xf32>
    %cst_47 = arith.constant 5.000000e-01 : f32
    %100 = vector.broadcast %cst_47 : f32 to vector<8x128xf32>
    %101 = arith.mulf %100, %99 : vector<8x128xf32>
    %102 = math.tanh %101 : vector<8x128xf32>
    %cst_48 = arith.constant 5.000000e-01 : f32
    %103 = vector.broadcast %cst_48 : f32 to vector<8x128xf32>
    %104 = arith.mulf %103, %102 : vector<8x128xf32>
    %cst_49 = arith.constant 5.000000e-01 : f32
    %105 = vector.broadcast %cst_49 : f32 to vector<8x128xf32>
    %106 = arith.addf %104, %105 : vector<8x128xf32>
    %107 = vector.extract_strided_slice %98 {offsets = [0, 128], sizes = [8, 128], strides = [1, 1]} : vector<8x512xf32> to vector<8x128xf32>
    %cst_50 = arith.constant 5.000000e-01 : f32
    %108 = vector.broadcast %cst_50 : f32 to vector<8x128xf32>
    %109 = arith.mulf %108, %107 : vector<8x128xf32>
    %110 = math.tanh %109 : vector<8x128xf32>
    %cst_51 = arith.constant 5.000000e-01 : f32
    %111 = vector.broadcast %cst_51 : f32 to vector<8x128xf32>
    %112 = arith.mulf %111, %110 : vector<8x128xf32>
    %cst_52 = arith.constant 5.000000e-01 : f32
    %113 = vector.broadcast %cst_52 : f32 to vector<8x128xf32>
    %114 = arith.addf %112, %113 : vector<8x128xf32>
    %115 = vector.extract_strided_slice %98 {offsets = [0, 256], sizes = [8, 128], strides = [1, 1]} : vector<8x512xf32> to vector<8x128xf32>
    %116 = math.tanh %115 : vector<8x128xf32>
    %117 = vector.extract_strided_slice %98 {offsets = [0, 384], sizes = [8, 128], strides = [1, 1]} : vector<8x512xf32> to vector<8x128xf32>
    %cst_53 = arith.constant 5.000000e-01 : f32
    %118 = vector.broadcast %cst_53 : f32 to vector<8x128xf32>
    %119 = arith.mulf %118, %117 : vector<8x128xf32>
    %120 = math.tanh %119 : vector<8x128xf32>
    %cst_54 = arith.constant 5.000000e-01 : f32
    %121 = vector.broadcast %cst_54 : f32 to vector<8x128xf32>
    %122 = arith.mulf %121, %120 : vector<8x128xf32>
    %cst_55 = arith.constant 5.000000e-01 : f32
    %123 = vector.broadcast %cst_55 : f32 to vector<8x128xf32>
    %124 = arith.addf %122, %123 : vector<8x128xf32>
    %125 = arith.mulf %114, %87 : vector<8x128xf32>
    %126 = arith.mulf %106, %116 : vector<8x128xf32>
    %127 = arith.addf %125, %126 : vector<8x128xf32>
    %128 = math.tanh %127 : vector<8x128xf32>
    %129 = arith.mulf %124, %128 : vector<8x128xf32>
    %130 = arith.index_cast %93 : i32 to index
    %c0_56 = arith.constant 0 : index
    %131 = vector.load %arg10[%130, %c0_56] : memref<64x128xf32, #tpu.memory_space<vmem>>, vector<8x128xf32>
    tpu.vector_store %arg10[%130, %c0_56], %129 {strides = array<i32>} : memref<64x128xf32, #tpu.memory_space<vmem>>, vector<8x128xf32>,
    %c3_i32 = arith.constant 3 : i32
    %c8_i32_57 = arith.constant 8 : i32
    %132 = arith.muli %c3_i32, %c8_i32_57 : i32
    %133 = tpu.assume_multiple %132, 8 : i32
    %134 = arith.index_cast %133 : i32 to index
    %c0_58 = arith.constant 0 : index
    %135 = vector.load %arg11[%134, %c0_58] : memref<64x512xf32, #tpu.memory_space<vmem>>, vector<8x512xf32>
    %c0_59 = arith.constant 0 : index
    %c0_60 = arith.constant 0 : index
    %136 = vector.load %arg3[%c0_59, %c0_60] : memref<128x512xf32, #tpu.memory_space<vmem>>, vector<128x512xf32>
    %cst_61 = arith.constant dense<0.000000e+00> : vector<8x512xf32>
    %137 = tpu.matmul %129, %136, %cst_61 {dimension_numbers = #tpu.dot_dimension_numbers<[1], [0], [0], [1], [0, 0, 1, 1], [], []>} : vector<8x128xf32>, vector<128x512xf32>, vector<8x512xf32> -> vector<8x512xf32>
    %138 = arith.addf %135, %137 : vector<8x512xf32>
    %139 = vector.extract_strided_slice %138 {offsets = [0, 0], sizes = [8, 128], strides = [1, 1]} : vector<8x512xf32> to vector<8x128xf32>
    %cst_62 = arith.constant 5.000000e-01 : f32
    %140 = vector.broadcast %cst_62 : f32 to vector<8x128xf32>
    %141 = arith.mulf %140, %139 : vector<8x128xf32>
    %142 = math.tanh %141 : vector<8x128xf32>
    %cst_63 = arith.constant 5.000000e-01 : f32
    %143 = vector.broadcast %cst_63 : f32 to vector<8x128xf32>
    %144 = arith.mulf %143, %142 : vector<8x128xf32>
    %cst_64 = arith.constant 5.000000e-01 : f32
    %145 = vector.broadcast %cst_64 : f32 to vector<8x128xf32>
    %146 = arith.addf %144, %145 : vector<8x128xf32>
    %147 = vector.extract_strided_slice %138 {offsets = [0, 128], sizes = [8, 128], strides = [1, 1]} : vector<8x512xf32> to vector<8x128xf32>
    %cst_65 = arith.constant 5.000000e-01 : f32
    %148 = vector.broadcast %cst_65 : f32 to vector<8x128xf32>
    %149 = arith.mulf %148, %147 : vector<8x128xf32>
    %150 = math.tanh %149 : vector<8x128xf32>
    %cst_66 = arith.constant 5.000000e-01 : f32
    %151 = vector.broadcast %cst_66 : f32 to vector<8x128xf32>
    %152 = arith.mulf %151, %150 : vector<8x128xf32>
    %cst_67 = arith.constant 5.000000e-01 : f32
    %153 = vector.broadcast %cst_67 : f32 to vector<8x128xf32>
    %154 = arith.addf %152, %153 : vector<8x128xf32>
    %155 = vector.extract_strided_slice %138 {offsets = [0, 256], sizes = [8, 128], strides = [1, 1]} : vector<8x512xf32> to vector<8x128xf32>
    %156 = math.tanh %155 : vector<8x128xf32>
    %157 = vector.extract_strided_slice %138 {offsets = [0, 384], sizes = [8, 128], strides = [1, 1]} : vector<8x512xf32> to vector<8x128xf32>
    %cst_68 = arith.constant 5.000000e-01 : f32
    %158 = vector.broadcast %cst_68 : f32 to vector<8x128xf32>
    %159 = arith.mulf %158, %157 : vector<8x128xf32>
    %160 = math.tanh %159 : vector<8x128xf32>
    %cst_69 = arith.constant 5.000000e-01 : f32
    %161 = vector.broadcast %cst_69 : f32 to vector<8x128xf32>
    %162 = arith.mulf %161, %160 : vector<8x128xf32>
    %cst_70 = arith.constant 5.000000e-01 : f32
    %163 = vector.broadcast %cst_70 : f32 to vector<8x128xf32>
    %164 = arith.addf %162, %163 : vector<8x128xf32>
    %165 = arith.mulf %154, %127 : vector<8x128xf32>
    %166 = arith.mulf %146, %156 : vector<8x128xf32>
    %167 = arith.addf %165, %166 : vector<8x128xf32>
    %168 = math.tanh %167 : vector<8x128xf32>
    %169 = arith.mulf %164, %168 : vector<8x128xf32>
    %170 = arith.index_cast %133 : i32 to index
    %c0_71 = arith.constant 0 : index
    %171 = vector.load %arg10[%170, %c0_71] : memref<64x128xf32, #tpu.memory_space<vmem>>, vector<8x128xf32>
    tpu.vector_store %arg10[%170, %c0_71], %169 {strides = array<i32>} : memref<64x128xf32, #tpu.memory_space<vmem>>, vector<8x128xf32>,
    %c4_i32 = arith.constant 4 : i32
    %c8_i32_72 = arith.constant 8 : i32
    %172 = arith.muli %c4_i32, %c8_i32_72 : i32
    %173 = tpu.assume_multiple %172, 8 : i32
    %174 = arith.index_cast %173 : i32 to index
    %c0_73 = arith.constant 0 : index
    %175 = vector.load %arg11[%174, %c0_73] : memref<64x512xf32, #tpu.memory_space<vmem>>, vector<8x512xf32>
    %c0_74 = arith.constant 0 : index
    %c0_75 = arith.constant 0 : index
    %176 = vector.load %arg3[%c0_74, %c0_75] : memref<128x512xf32, #tpu.memory_space<vmem>>, vector<128x512xf32>
    %cst_76 = arith.constant dense<0.000000e+00> : vector<8x512xf32>
    %177 = tpu.matmul %169, %176, %cst_76 {dimension_numbers = #tpu.dot_dimension_numbers<[1], [0], [0], [1], [0, 0, 1, 1], [], []>} : vector<8x128xf32>, vector<128x512xf32>, vector<8x512xf32> -> vector<8x512xf32>
    %178 = arith.addf %175, %177 : vector<8x512xf32>
    %179 = vector.extract_strided_slice %178 {offsets = [0, 0], sizes = [8, 128], strides = [1, 1]} : vector<8x512xf32> to vector<8x128xf32>
    %cst_77 = arith.constant 5.000000e-01 : f32
    %180 = vector.broadcast %cst_77 : f32 to vector<8x128xf32>
    %181 = arith.mulf %180, %179 : vector<8x128xf32>
    %182 = math.tanh %181 : vector<8x128xf32>
    %cst_78 = arith.constant 5.000000e-01 : f32
    %183 = vector.broadcast %cst_78 : f32 to vector<8x128xf32>
    %184 = arith.mulf %183, %182 : vector<8x128xf32>
    %cst_79 = arith.constant 5.000000e-01 : f32
    %185 = vector.broadcast %cst_79 : f32 to vector<8x128xf32>
    %186 = arith.addf %184, %185 : vector<8x128xf32>
    %187 = vector.extract_strided_slice %178 {offsets = [0, 128], sizes = [8, 128], strides = [1, 1]} : vector<8x512xf32> to vector<8x128xf32>
    %cst_80 = arith.constant 5.000000e-01 : f32
    %188 = vector.broadcast %cst_80 : f32 to vector<8x128xf32>
    %189 = arith.mulf %188, %187 : vector<8x128xf32>
    %190 = math.tanh %189 : vector<8x128xf32>
    %cst_81 = arith.constant 5.000000e-01 : f32
    %191 = vector.broadcast %cst_81 : f32 to vector<8x128xf32>
    %192 = arith.mulf %191, %190 : vector<8x128xf32>
    %cst_82 = arith.constant 5.000000e-01 : f32
    %193 = vector.broadcast %cst_82 : f32 to vector<8x128xf32>
    %194 = arith.addf %192, %193 : vector<8x128xf32>
    %195 = vector.extract_strided_slice %178 {offsets = [0, 256], sizes = [8, 128], strides = [1, 1]} : vector<8x512xf32> to vector<8x128xf32>
    %196 = math.tanh %195 : vector<8x128xf32>
    %197 = vector.extract_strided_slice %178 {offsets = [0, 384], sizes = [8, 128], strides = [1, 1]} : vector<8x512xf32> to vector<8x128xf32>
    %cst_83 = arith.constant 5.000000e-01 : f32
    %198 = vector.broadcast %cst_83 : f32 to vector<8x128xf32>
    %199 = arith.mulf %198, %197 : vector<8x128xf32>
    %200 = math.tanh %199 : vector<8x128xf32>
    %cst_84 = arith.constant 5.000000e-01 : f32
    %201 = vector.broadcast %cst_84 : f32 to vector<8x128xf32>
    %202 = arith.mulf %201, %200 : vector<8x128xf32>
    %cst_85 = arith.constant 5.000000e-01 : f32
    %203 = vector.broadcast %cst_85 : f32 to vector<8x128xf32>
    %204 = arith.addf %202, %203 : vector<8x128xf32>
    %205 = arith.mulf %194, %167 : vector<8x128xf32>
    %206 = arith.mulf %186, %196 : vector<8x128xf32>
    %207 = arith.addf %205, %206 : vector<8x128xf32>
    %208 = math.tanh %207 : vector<8x128xf32>
    %209 = arith.mulf %204, %208 : vector<8x128xf32>
    %210 = arith.index_cast %173 : i32 to index
    %c0_86 = arith.constant 0 : index
    %211 = vector.load %arg10[%210, %c0_86] : memref<64x128xf32, #tpu.memory_space<vmem>>, vector<8x128xf32>
    tpu.vector_store %arg10[%210, %c0_86], %209 {strides = array<i32>} : memref<64x128xf32, #tpu.memory_space<vmem>>, vector<8x128xf32>,
    %c5_i32 = arith.constant 5 : i32
    %c8_i32_87 = arith.constant 8 : i32
    %212 = arith.muli %c5_i32, %c8_i32_87 : i32
    %213 = tpu.assume_multiple %212, 8 : i32
    %214 = arith.index_cast %213 : i32 to index
    %c0_88 = arith.constant 0 : index
    %215 = vector.load %arg11[%214, %c0_88] : memref<64x512xf32, #tpu.memory_space<vmem>>, vector<8x512xf32>
    %c0_89 = arith.constant 0 : index
    %c0_90 = arith.constant 0 : index
    %216 = vector.load %arg3[%c0_89, %c0_90] : memref<128x512xf32, #tpu.memory_space<vmem>>, vector<128x512xf32>
    %cst_91 = arith.constant dense<0.000000e+00> : vector<8x512xf32>
    %217 = tpu.matmul %209, %216, %cst_91 {dimension_numbers = #tpu.dot_dimension_numbers<[1], [0], [0], [1], [0, 0, 1, 1], [], []>} : vector<8x128xf32>, vector<128x512xf32>, vector<8x512xf32> -> vector<8x512xf32>
    %218 = arith.addf %215, %217 : vector<8x512xf32>
    %219 = vector.extract_strided_slice %218 {offsets = [0, 0], sizes = [8, 128], strides = [1, 1]} : vector<8x512xf32> to vector<8x128xf32>
    %cst_92 = arith.constant 5.000000e-01 : f32
    %220 = vector.broadcast %cst_92 : f32 to vector<8x128xf32>
    %221 = arith.mulf %220, %219 : vector<8x128xf32>
    %222 = math.tanh %221 : vector<8x128xf32>
    %cst_93 = arith.constant 5.000000e-01 : f32
    %223 = vector.broadcast %cst_93 : f32 to vector<8x128xf32>
    %224 = arith.mulf %223, %222 : vector<8x128xf32>
    %cst_94 = arith.constant 5.000000e-01 : f32
    %225 = vector.broadcast %cst_94 : f32 to vector<8x128xf32>
    %226 = arith.addf %224, %225 : vector<8x128xf32>
    %227 = vector.extract_strided_slice %218 {offsets = [0, 128], sizes = [8, 128], strides = [1, 1]} : vector<8x512xf32> to vector<8x128xf32>
    %cst_95 = arith.constant 5.000000e-01 : f32
    %228 = vector.broadcast %cst_95 : f32 to vector<8x128xf32>
    %229 = arith.mulf %228, %227 : vector<8x128xf32>
    %230 = math.tanh %229 : vector<8x128xf32>
    %cst_96 = arith.constant 5.000000e-01 : f32
    %231 = vector.broadcast %cst_96 : f32 to vector<8x128xf32>
    %232 = arith.mulf %231, %230 : vector<8x128xf32>
    %cst_97 = arith.constant 5.000000e-01 : f32
    %233 = vector.broadcast %cst_97 : f32 to vector<8x128xf32>
    %234 = arith.addf %232, %233 : vector<8x128xf32>
    %235 = vector.extract_strided_slice %218 {offsets = [0, 256], sizes = [8, 128], strides = [1, 1]} : vector<8x512xf32> to vector<8x128xf32>
    %236 = math.tanh %235 : vector<8x128xf32>
    %237 = vector.extract_strided_slice %218 {offsets = [0, 384], sizes = [8, 128], strides = [1, 1]} : vector<8x512xf32> to vector<8x128xf32>
    %cst_98 = arith.constant 5.000000e-01 : f32
    %238 = vector.broadcast %cst_98 : f32 to vector<8x128xf32>
    %239 = arith.mulf %238, %237 : vector<8x128xf32>
    %240 = math.tanh %239 : vector<8x128xf32>
    %cst_99 = arith.constant 5.000000e-01 : f32
    %241 = vector.broadcast %cst_99 : f32 to vector<8x128xf32>
    %242 = arith.mulf %241, %240 : vector<8x128xf32>
    %cst_100 = arith.constant 5.000000e-01 : f32
    %243 = vector.broadcast %cst_100 : f32 to vector<8x128xf32>
    %244 = arith.addf %242, %243 : vector<8x128xf32>
    %245 = arith.mulf %234, %207 : vector<8x128xf32>
    %246 = arith.mulf %226, %236 : vector<8x128xf32>
    %247 = arith.addf %245, %246 : vector<8x128xf32>
    %248 = math.tanh %247 : vector<8x128xf32>
    %249 = arith.mulf %244, %248 : vector<8x128xf32>
    %250 = arith.index_cast %213 : i32 to index
    %c0_101 = arith.constant 0 : index
    %251 = vector.load %arg10[%250, %c0_101] : memref<64x128xf32, #tpu.memory_space<vmem>>, vector<8x128xf32>
    tpu.vector_store %arg10[%250, %c0_101], %249 {strides = array<i32>} : memref<64x128xf32, #tpu.memory_space<vmem>>, vector<8x128xf32>,
    %c6_i32 = arith.constant 6 : i32
    %c8_i32_102 = arith.constant 8 : i32
    %252 = arith.muli %c6_i32, %c8_i32_102 : i32
    %253 = tpu.assume_multiple %252, 8 : i32
    %254 = arith.index_cast %253 : i32 to index
    %c0_103 = arith.constant 0 : index
    %255 = vector.load %arg11[%254, %c0_103] : memref<64x512xf32, #tpu.memory_space<vmem>>, vector<8x512xf32>
    %c0_104 = arith.constant 0 : index
    %c0_105 = arith.constant 0 : index
    %256 = vector.load %arg3[%c0_104, %c0_105] : memref<128x512xf32, #tpu.memory_space<vmem>>, vector<128x512xf32>
    %cst_106 = arith.constant dense<0.000000e+00> : vector<8x512xf32>
    %257 = tpu.matmul %249, %256, %cst_106 {dimension_numbers = #tpu.dot_dimension_numbers<[1], [0], [0], [1], [0, 0, 1, 1], [], []>} : vector<8x128xf32>, vector<128x512xf32>, vector<8x512xf32> -> vector<8x512xf32>
    %258 = arith.addf %255, %257 : vector<8x512xf32>
    %259 = vector.extract_strided_slice %258 {offsets = [0, 0], sizes = [8, 128], strides = [1, 1]} : vector<8x512xf32> to vector<8x128xf32>
    %cst_107 = arith.constant 5.000000e-01 : f32
    %260 = vector.broadcast %cst_107 : f32 to vector<8x128xf32>
    %261 = arith.mulf %260, %259 : vector<8x128xf32>
    %262 = math.tanh %261 : vector<8x128xf32>
    %cst_108 = arith.constant 5.000000e-01 : f32
    %263 = vector.broadcast %cst_108 : f32 to vector<8x128xf32>
    %264 = arith.mulf %263, %262 : vector<8x128xf32>
    %cst_109 = arith.constant 5.000000e-01 : f32
    %265 = vector.broadcast %cst_109 : f32 to vector<8x128xf32>
    %266 = arith.addf %264, %265 : vector<8x128xf32>
    %267 = vector.extract_strided_slice %258 {offsets = [0, 128], sizes = [8, 128], strides = [1, 1]} : vector<8x512xf32> to vector<8x128xf32>
    %cst_110 = arith.constant 5.000000e-01 : f32
    %268 = vector.broadcast %cst_110 : f32 to vector<8x128xf32>
    %269 = arith.mulf %268, %267 : vector<8x128xf32>
    %270 = math.tanh %269 : vector<8x128xf32>
    %cst_111 = arith.constant 5.000000e-01 : f32
    %271 = vector.broadcast %cst_111 : f32 to vector<8x128xf32>
    %272 = arith.mulf %271, %270 : vector<8x128xf32>
    %cst_112 = arith.constant 5.000000e-01 : f32
    %273 = vector.broadcast %cst_112 : f32 to vector<8x128xf32>
    %274 = arith.addf %272, %273 : vector<8x128xf32>
    %275 = vector.extract_strided_slice %258 {offsets = [0, 256], sizes = [8, 128], strides = [1, 1]} : vector<8x512xf32> to vector<8x128xf32>
    %276 = math.tanh %275 : vector<8x128xf32>
    %277 = vector.extract_strided_slice %258 {offsets = [0, 384], sizes = [8, 128], strides = [1, 1]} : vector<8x512xf32> to vector<8x128xf32>
    %cst_113 = arith.constant 5.000000e-01 : f32
    %278 = vector.broadcast %cst_113 : f32 to vector<8x128xf32>
    %279 = arith.mulf %278, %277 : vector<8x128xf32>
    %280 = math.tanh %279 : vector<8x128xf32>
    %cst_114 = arith.constant 5.000000e-01 : f32
    %281 = vector.broadcast %cst_114 : f32 to vector<8x128xf32>
    %282 = arith.mulf %281, %280 : vector<8x128xf32>
    %cst_115 = arith.constant 5.000000e-01 : f32
    %283 = vector.broadcast %cst_115 : f32 to vector<8x128xf32>
    %284 = arith.addf %282, %283 : vector<8x128xf32>
    %285 = arith.mulf %274, %247 : vector<8x128xf32>
    %286 = arith.mulf %266, %276 : vector<8x128xf32>
    %287 = arith.addf %285, %286 : vector<8x128xf32>
    %288 = math.tanh %287 : vector<8x128xf32>
    %289 = arith.mulf %284, %288 : vector<8x128xf32>
    %290 = arith.index_cast %253 : i32 to index
    %c0_116 = arith.constant 0 : index
    %291 = vector.load %arg10[%290, %c0_116] : memref<64x128xf32, #tpu.memory_space<vmem>>, vector<8x128xf32>
    tpu.vector_store %arg10[%290, %c0_116], %289 {strides = array<i32>} : memref<64x128xf32, #tpu.memory_space<vmem>>, vector<8x128xf32>,
    %c7_i32 = arith.constant 7 : i32
    %c8_i32_117 = arith.constant 8 : i32
    %292 = arith.muli %c7_i32, %c8_i32_117 : i32
    %293 = tpu.assume_multiple %292, 8 : i32
    %294 = arith.index_cast %293 : i32 to index
    %c0_118 = arith.constant 0 : index
    %295 = vector.load %arg11[%294, %c0_118] : memref<64x512xf32, #tpu.memory_space<vmem>>, vector<8x512xf32>
    %c0_119 = arith.constant 0 : index
    %c0_120 = arith.constant 0 : index
    %296 = vector.load %arg3[%c0_119, %c0_120] : memref<128x512xf32, #tpu.memory_space<vmem>>, vector<128x512xf32>
    %cst_121 = arith.constant dense<0.000000e+00> : vector<8x512xf32>
    %297 = tpu.matmul %289, %296, %cst_121 {dimension_numbers = #tpu.dot_dimension_numbers<[1], [0], [0], [1], [0, 0, 1, 1], [], []>} : vector<8x128xf32>, vector<128x512xf32>, vector<8x512xf32> -> vector<8x512xf32>
    %298 = arith.addf %295, %297 : vector<8x512xf32>
    %299 = vector.extract_strided_slice %298 {offsets = [0, 0], sizes = [8, 128], strides = [1, 1]} : vector<8x512xf32> to vector<8x128xf32>
    %cst_122 = arith.constant 5.000000e-01 : f32
    %300 = vector.broadcast %cst_122 : f32 to vector<8x128xf32>
    %301 = arith.mulf %300, %299 : vector<8x128xf32>
    %302 = math.tanh %301 : vector<8x128xf32>
    %cst_123 = arith.constant 5.000000e-01 : f32
    %303 = vector.broadcast %cst_123 : f32 to vector<8x128xf32>
    %304 = arith.mulf %303, %302 : vector<8x128xf32>
    %cst_124 = arith.constant 5.000000e-01 : f32
    %305 = vector.broadcast %cst_124 : f32 to vector<8x128xf32>
    %306 = arith.addf %304, %305 : vector<8x128xf32>
    %307 = vector.extract_strided_slice %298 {offsets = [0, 128], sizes = [8, 128], strides = [1, 1]} : vector<8x512xf32> to vector<8x128xf32>
    %cst_125 = arith.constant 5.000000e-01 : f32
    %308 = vector.broadcast %cst_125 : f32 to vector<8x128xf32>
    %309 = arith.mulf %308, %307 : vector<8x128xf32>
    %310 = math.tanh %309 : vector<8x128xf32>
    %cst_126 = arith.constant 5.000000e-01 : f32
    %311 = vector.broadcast %cst_126 : f32 to vector<8x128xf32>
    %312 = arith.mulf %311, %310 : vector<8x128xf32>
    %cst_127 = arith.constant 5.000000e-01 : f32
    %313 = vector.broadcast %cst_127 : f32 to vector<8x128xf32>
    %314 = arith.addf %312, %313 : vector<8x128xf32>
    %315 = vector.extract_strided_slice %298 {offsets = [0, 256], sizes = [8, 128], strides = [1, 1]} : vector<8x512xf32> to vector<8x128xf32>
    %316 = math.tanh %315 : vector<8x128xf32>
    %317 = vector.extract_strided_slice %298 {offsets = [0, 384], sizes = [8, 128], strides = [1, 1]} : vector<8x512xf32> to vector<8x128xf32>
    %cst_128 = arith.constant 5.000000e-01 : f32
    %318 = vector.broadcast %cst_128 : f32 to vector<8x128xf32>
    %319 = arith.mulf %318, %317 : vector<8x128xf32>
    %320 = math.tanh %319 : vector<8x128xf32>
    %cst_129 = arith.constant 5.000000e-01 : f32
    %321 = vector.broadcast %cst_129 : f32 to vector<8x128xf32>
    %322 = arith.mulf %321, %320 : vector<8x128xf32>
    %cst_130 = arith.constant 5.000000e-01 : f32
    %323 = vector.broadcast %cst_130 : f32 to vector<8x128xf32>
    %324 = arith.addf %322, %323 : vector<8x128xf32>
    %325 = arith.mulf %314, %287 : vector<8x128xf32>
    %326 = arith.mulf %306, %316 : vector<8x128xf32>
    %327 = arith.addf %325, %326 : vector<8x128xf32>
    %328 = math.tanh %327 : vector<8x128xf32>
    %329 = arith.mulf %324, %328 : vector<8x128xf32>
    %330 = arith.index_cast %293 : i32 to index
    %c0_131 = arith.constant 0 : index
    %331 = vector.load %arg10[%330, %c0_131] : memref<64x128xf32, #tpu.memory_space<vmem>>, vector<8x128xf32>
    tpu.vector_store %arg10[%330, %c0_131], %329 {strides = array<i32>} : memref<64x128xf32, #tpu.memory_space<vmem>>, vector<8x128xf32>,
    %c8_i32_132 = arith.constant 8 : i32
    %c0_133 = arith.constant 0 : index
    %c0_134 = arith.constant 0 : index
    %332 = vector.load %arg8[%c0_133, %c0_134] : memref<8x128xf32, #tpu.memory_space<vmem>>, vector<8x128xf32>
    tpu.vector_store %arg8[%c0_133, %c0_134], %329 {strides = array<i32>} : memref<8x128xf32, #tpu.memory_space<vmem>>, vector<8x128xf32>,
    %c0_135 = arith.constant 0 : index
    %c0_136 = arith.constant 0 : index
    %333 = vector.load %arg9[%c0_135, %c0_136] : memref<8x128xf32, #tpu.memory_space<vmem>>, vector<8x128xf32>
    tpu.vector_store %arg9[%c0_135, %c0_136], %327 {strides = array<i32>} : memref<8x128xf32, #tpu.memory_space<vmem>>, vector<8x128xf32>,
    %c0_137 = arith.constant 0 : index
    %c0_138 = arith.constant 0 : index
    %334 = vector.load %arg10[%c0_137, %c0_138] : memref<64x128xf32, #tpu.memory_space<vmem>>, vector<64x128xf32>
    %c0_139 = arith.constant 0 : index
    %c0_140 = arith.constant 0 : index
    %335 = vector.load %arg5[%c0_139, %c0_140] : memref<128x128xf32, #tpu.memory_space<vmem>>, vector<128x128xf32>
    %cst_141 = arith.constant dense<0.000000e+00> : vector<64x128xf32>
    %336 = tpu.matmul %334, %335, %cst_141 {dimension_numbers = #tpu.dot_dimension_numbers<[1], [0], [0], [1], [0, 0, 1, 1], [], []>} : vector<64x128xf32>, vector<128x128xf32>, vector<64x128xf32> -> vector<64x128xf32>
    %c0_142 = arith.constant 0 : index
    %c0_143 = arith.constant 0 : index
    %337 = vector.load %arg6[%c0_142, %c0_143] : memref<1x128xf32, #tpu.memory_space<vmem>>, vector<1x128xf32>
    %338 = vector.broadcast %337 : vector<1x128xf32> to vector<64x128xf32>
    %339 = arith.addf %336, %338 : vector<64x128xf32>
    %c0_144 = arith.constant 0 : index
    %c0_145 = arith.constant 0 : index
    %340 = vector.load %arg7[%c0_144, %c0_145] : memref<64x128xf32, #tpu.memory_space<vmem>>, vector<64x128xf32>
    tpu.vector_store %arg7[%c0_144, %c0_145], %339 {strides = array<i32>} : memref<64x128xf32, #tpu.memory_space<vmem>>, vector<64x128xf32>,
    return
  }
  func.func @transform_0(%arg0: i32) -> (i32, i32) {
    %c0_i32 = arith.constant 0 : i32
    %c0_i32_0 = arith.constant 0 : i32
    return %arg0, %c0_i32 : i32, i32
  }
  func.func @transform_1(%arg0: i32) -> (i32, i32) {
    %c0_i32 = arith.constant 0 : i32
    %c0_i32_0 = arith.constant 0 : i32
    %c0_i32_1 = arith.constant 0 : i32
    return %c0_i32, %c0_i32_0 : i32, i32
  }
  func.func @transform_2(%arg0: i32) -> (i32, i32) {
    %c0_i32 = arith.constant 0 : i32
    %c0_i32_0 = arith.constant 0 : i32
    %c0_i32_1 = arith.constant 0 : i32
    return %c0_i32, %c0_i32_0 : i32, i32
  }
  func.func @transform_3(%arg0: i32) -> (i32, i32) {
    %c0_i32 = arith.constant 0 : i32
    %c0_i32_0 = arith.constant 0 : i32
    %c0_i32_1 = arith.constant 0 : i32
    return %c0_i32, %c0_i32_0 : i32, i32
  }
  func.func @transform_4(%arg0: i32) -> (i32, i32) {
    %c0_i32 = arith.constant 0 : i32
    %c0_i32_0 = arith.constant 0 : i32
    %c0_i32_1 = arith.constant 0 : i32
    return %c0_i32, %c0_i32_0 : i32, i32
  }
  func.func @transform_5(%arg0: i32) -> (i32, i32) {
    %c0_i32 = arith.constant 0 : i32
    %c0_i32_0 = arith.constant 0 : i32
    %c0_i32_1 = arith.constant 0 : i32
    return %c0_i32, %c0_i32_0 : i32, i32
  }
  func.func @transform_6(%arg0: i32) -> (i32, i32) {
    %c0_i32 = arith.constant 0 : i32
    %c0_i32_0 = arith.constant 0 : i32
    return %arg0, %c0_i32 : i32, i32
  }
}

</mosaic_0001>

<bundles_post_ra>
// kernel: lm_lstm_forward.1
= control target key start
LH: loop header
LB: loop body
LE: loop exit
PB: predicated region body
PF: predicated region fallthrough
CT: control target
= control target key end

     0   :  { %v1896_v57 = vmov 0.0   ;;  %s3706_s1 = inlined_call_operand.vmem [shape: f32[128,512], index: 1, kind: input, shape index: {}]   ;;  %s3707_s2 = inlined_call_operand.vmem [shape: f32[128,512], index: 2, kind: input, shape index: {}]   ;;  %s3708_s0 = inlined_call_operand.vmem [shape: f32[64,128], index: 0, kind: input, shape index: {}]   ;;  %s3709_s3 = inlined_call_operand.vmem [shape: f32[1,512], index: 3, kind: input, shape index: {}]   ;;  %s3710_s4 = inlined_call_operand.vmem [shape: f32[128,128], index: 4, kind: input, shape index: {}]   ;;  %s3711_s5 = inlined_call_operand.vmem [shape: f32[1,128], index: 5, kind: input, shape index: {}]   ;;  %s3712_s6 = inlined_call_operand.vmem [shape: f32[64,128], index: 6, kind: output, shape index: {}]  }
   0x1   :  { %v97_v0 = vld [vmem:[%s3706_s1 + $0x1e0] sm:$0xff]  ;;  %v100_v1 = vld [vmem:[%s3706_s1 + $0x1f8] sm:$0xff]  ;;  %v98_v49 = vld [vmem:[%s3706_s1 + $0x1e8] sm:$0xff] }
   0x2   :  { %v93_v2 = vld [vmem:[%s3706_s1 + $0x1c0] sm:$0xff]  ;;  %111 = vmatpush.msra.mxu1 %v97_v0  ;;  %1798 = vmatpush.msra.mxu2 %v97_v0  ;;  %v96_v3 = vld [vmem:[%s3706_s1 + $0x1d8] sm:$0xff]  ;;  %v99_v50 = vld [vmem:[%s3706_s1 + $0x1f0] sm:$0xff] }
   0x3   :  { %v1947_v4 = vld [vmem:[%s3707_s2 + $0x1e0] sm:$0xff]  ;;  %234 = vmatpush.msra.mxu3 %v100_v1  ;;  %v92_v7 = vld [vmem:[%s3706_s1 + $0x1b8] sm:$0xff]  ;;  %v94_v52 = vld [vmem:[%s3706_s1 + $0x1c8] sm:$0xff] }
   0x4   :  { %380 = vmatpush.msra.mxu0 %v1947_v4  ;;  %v89_v5 = vld [vmem:[%s3706_s1 + $0x1a0] sm:$0xff]  ;;  %112 = vmatpush.msra.mxu1 %v93_v2  ;;  %v88_v10 = vld [vmem:[%s3706_s1 + $0x198] sm:$0xff]  ;;  %v95_v53 = vld [vmem:[%s3706_s1 + $0x1d0] sm:$0xff] }
   0x5   :  { %v1956_v6 = vld [vmem:[%s3707_s2 + $0x1c0] sm:$0xff]  ;;  %1799 = vmatpush.msra.mxu2 %v93_v2  ;;  %235 = vmatpush.msra.mxu3 %v96_v3  ;;  %v84_v13 = vld [vmem:[%s3706_s1 + $0x178] sm:$0xff]  ;;  %v90_v54 = vld [vmem:[%s3706_s1 + $0x1a8] sm:$0xff] }
   0x6   :  { %v1964_v8 = vld [vmem:[%s3707_s2 + $0x1a0] sm:$0xff]  ;;  %381 = vmatpush.msra.mxu0 %v1956_v6  ;;  %113 = vmatpush.msra.mxu1 %v89_v5  ;;  %v80_v16 = vld [vmem:[%s3706_s1 + $0x158] sm:$0xff]  ;;  %v91_v56 = vld [vmem:[%s3706_s1 + $0x1b0] sm:$0xff] }
   0x7   :  { %v85_v9 = vld [vmem:[%s3706_s1 + $0x180] sm:$0xff]  ;;  %1800 = vmatpush.msra.mxu2 %v89_v5  ;;  %236 = vmatpush.msra.mxu3 %v92_v7  ;;  %v76_v19 = vld [vmem:[%s3706_s1 + $0x138] sm:$0xff]  ;;  %v86_v58 = vld [vmem:[%s3706_s1 + $0x188] sm:$0xff] }
   0x8   :  { %v1976_v11 = vld [vmem:[%s3707_s2 + $0x180] sm:$0xff]  ;;  %382 = vmatpush.msra.mxu0 %v1964_v8  ;;  %114 = vmatpush.msra.mxu1 %v85_v9  ;;  %v72_v22 = vld [vmem:[%s3706_s1 + $0x118] sm:$0xff]  ;;  %v87_v60 = vld [vmem:[%s3706_s1 + $0x190] sm:$0xff] }
   0x9   :  { %v81_v12 = vld [vmem:[%s3706_s1 + $0x160] sm:$0xff]  ;;  %1801 = vmatpush.msra.mxu2 %v85_v9  ;;  %237 = vmatpush.msra.mxu3 %v88_v10  ;;  %v68_v25 = vld [vmem:[%s3706_s1 + $0xf8] sm:$0xff]  ;;  %v2175_v61 = vld [vmem:[%s3708_s0 + $0x8] sm:$0xff] }
   0xa   :  { %v1988_v14 = vld [vmem:[%s3707_s2 + $0x160] sm:$0xff]  ;;  %383 = vmatpush.msra.mxu0 %v1976_v11  ;;  %115 = vmatpush.msra.mxu1 %v81_v12  ;;  %v64_v28 = vld [vmem:[%s3706_s1 + $0xd8] sm:$0xff]  ;;  %v2181_v62 = vld [vmem:[%s3708_s0 + $0x28] sm:$0xff] }
   0xb   :  { %v77_v15 = vld [vmem:[%s3706_s1 + $0x140] sm:$0xff]  ;;  %1802 = vmatpush.msra.mxu2 %v81_v12  ;;  %238 = vmatpush.msra.mxu3 %v84_v13  ;;  %v60_v31 = vld [vmem:[%s3706_s1 + $0xb8] sm:$0xff]  ;;  %v82_v63 = vld [vmem:[%s3706_s1 + $0x168] sm:$0xff] }
   0xc   :  { %v2000_v17 = vld [vmem:[%s3707_s2 + $0x140] sm:$0xff]  ;;  %384 = vmatpush.msra.mxu0 %v1988_v14  ;;  %116 = vmatpush.msra.mxu1 %v77_v15  ;;  %v56_v34 = vld [vmem:[%s3706_s1 + $0x98] sm:$0xff]  ;;  %v83_v0 = vld [vmem:[%s3706_s1 + $0x170] sm:$0xff] }
   0xd   :  { %v73_v18 = vld [vmem:[%s3706_s1 + $0x120] sm:$0xff]  ;;  %1803 = vmatpush.msra.mxu2 %v77_v15  ;;  %239 = vmatpush.msra.mxu3 %v80_v16  ;;  %v52_v37 = vld [vmem:[%s3706_s1 + $0x78] sm:$0xff]  ;;  %v78_v1 = vld [vmem:[%s3706_s1 + $0x148] sm:$0xff] }
   0xe   :  { %v2012_v20 = vld [vmem:[%s3707_s2 + $0x120] sm:$0xff]  ;;  %385 = vmatpush.msra.mxu0 %v2000_v17  ;;  %117 = vmatpush.msra.mxu1 %v73_v18  ;;  %v48_v40 = vld [vmem:[%s3706_s1 + $0x58] sm:$0xff]  ;;  %v79_v3 = vld [vmem:[%s3706_s1 + $0x150] sm:$0xff] }
   0xf   :  { %v69_v21 = vld [vmem:[%s3706_s1 + $0x100] sm:$0xff]  ;;  %1804 = vmatpush.msra.mxu2 %v73_v18  ;;  %240 = vmatpush.msra.mxu3 %v76_v19  ;;  %v44_v43 = vld [vmem:[%s3706_s1 + $0x38] sm:$0xff]  ;;  %v75_v7 = vld [vmem:[%s3706_s1 + $0x130] sm:$0xff] }
  0x10   :  { %v2024_v23 = vld [vmem:[%s3707_s2 + $0x100] sm:$0xff]  ;;  %386 = vmatpush.msra.mxu0 %v2012_v20  ;;  %118 = vmatpush.msra.mxu1 %v69_v21  ;;  %v40_v46 = vld [vmem:[%s3706_s1 + $0x18] sm:$0xff]  ;;  %v70_v9 = vld [vmem:[%s3706_s1 + $0x108] sm:$0xff] }
  0x11   :  { %v65_v24 = vld [vmem:[%s3706_s1 + $0xe0] sm:$0xff]  ;;  %1805 = vmatpush.msra.mxu2 %v69_v21  ;;  %241 = vmatpush.msra.mxu3 %v72_v22  ;;  %v2154_v55 = vld [vmem:[%s3707_s2 + $0x1f8] sm:$0xff]  ;;  %v71_v12 = vld [vmem:[%s3706_s1 + $0x110] sm:$0xff] }
  0x12   :  { %v2036_v26 = vld [vmem:[%s3707_s2 + $0xe0] sm:$0xff]  ;;  %387 = vmatpush.msra.mxu0 %v2024_v23  ;;  %119 = vmatpush.msra.mxu1 %v65_v24  ;;  %v2167_v59 = vld [vmem:[%s3707_s2 + $0x1d8] sm:$0xff]  ;;  %v2232_v13 = vld [vmem:[%s3708_s0 + $0x10] sm:$0xff] }
  0x13   :  { %v61_v27 = vld [vmem:[%s3706_s1 + $0xc0] sm:$0xff]  ;;  %1806 = vmatpush.msra.mxu2 %v65_v24  ;;  %242 = vmatpush.msra.mxu3 %v68_v25  ;;  %v2198_v2 = vld [vmem:[%s3707_s2 + $0x1b8] sm:$0xff]  ;;  %v2238_v15 = vld [vmem:[%s3708_s0 + $0x30] sm:$0xff] }
  0x14   :  { %v2048_v29 = vld [vmem:[%s3707_s2 + $0xc0] sm:$0xff]  ;;  %388 = vmatpush.msra.mxu0 %v2036_v26  ;;  %120 = vmatpush.msra.mxu1 %v61_v27  ;;  %v2211_v5 = vld [vmem:[%s3707_s2 + $0x198] sm:$0xff]  ;;  %v67_v16 = vld [vmem:[%s3706_s1 + $0xf0] sm:$0xff] }
  0x15   :  { %v57_v30 = vld [vmem:[%s3706_s1 + $0xa0] sm:$0xff]  ;;  %1807 = vmatpush.msra.mxu2 %v61_v27  ;;  %243 = vmatpush.msra.mxu3 %v64_v28  ;;  %v2223_v10 = vld [vmem:[%s3707_s2 + $0x178] sm:$0xff]  ;;  %v62_v18 = vld [vmem:[%s3706_s1 + $0xc8] sm:$0xff] }
  0x16   :  { %v2060_v32 = vld [vmem:[%s3707_s2 + $0xa0] sm:$0xff]  ;;  %389 = vmatpush.msra.mxu0 %v2048_v29  ;;  %121 = vmatpush.msra.mxu1 %v57_v30  ;;  %v2255_v19 = vld [vmem:[%s3707_s2 + $0x158] sm:$0xff]  ;;  %v58_v21 = vld [vmem:[%s3706_s1 + $0xa8] sm:$0xff] }
  0x17   :  { %v53_v33 = vld [vmem:[%s3706_s1 + $0x80] sm:$0xff]  ;;  %1808 = vmatpush.msra.mxu2 %v57_v30  ;;  %244 = vmatpush.msra.mxu3 %v60_v31  ;;  %v2268_v22 = vld [vmem:[%s3707_s2 + $0x138] sm:$0xff]  ;;  %v59_v24 = vld [vmem:[%s3706_s1 + $0xb0] sm:$0xff] }
  0x18   :  { %v2072_v35 = vld [vmem:[%s3707_s2 + $0x80] sm:$0xff]  ;;  %390 = vmatpush.msra.mxu0 %v2060_v32  ;;  %122 = vmatpush.msra.mxu1 %v53_v33  ;;  %v54_v25 = vld [vmem:[%s3706_s1 + $0x88] sm:$0xff]  ;;  %v2280_v27 = vld [vmem:[%s3707_s2 + $0x118] sm:$0xff] }
  0x19   :  { %v49_v36 = vld [vmem:[%s3706_s1 + $0x60] sm:$0xff]  ;;  %1809 = vmatpush.msra.mxu2 %v53_v33  ;;  %245 = vmatpush.msra.mxu3 %v56_v34  ;;  %v55_v28 = vld [vmem:[%s3706_s1 + $0x90] sm:$0xff]  ;;  %v2289_v30 = vld [vmem:[%s3708_s0 + $0x18] sm:$0xff] }
  0x1a   :  { %v2084_v38 = vld [vmem:[%s3707_s2 + $0x60] sm:$0xff]  ;;  %391 = vmatpush.msra.mxu0 %v2072_v35  ;;  %123 = vmatpush.msra.mxu1 %v49_v36  ;;  %v2295_v31 = vld [vmem:[%s3708_s0 + $0x38] sm:$0xff]  ;;  %v51_v33 = vld [vmem:[%s3706_s1 + $0x70] sm:$0xff] }
  0x1b   :  { %v45_v39 = vld [vmem:[%s3706_s1 + $0x40] sm:$0xff]  ;;  %1810 = vmatpush.msra.mxu2 %v49_v36  ;;  %246 = vmatpush.msra.mxu3 %v52_v37  ;;  %v46_v34 = vld [vmem:[%s3706_s1 + $0x48] sm:$0xff]  ;;  %v2312_v36 = vld [vmem:[%s3707_s2 + $0xf8] sm:$0xff] }
  0x1c   :  { %v2096_v41 = vld [vmem:[%s3707_s2 + $0x40] sm:$0xff]  ;;  %392 = vmatpush.msra.mxu0 %v2084_v38  ;;  %124 = vmatpush.msra.mxu1 %v45_v39  ;;  %v42_v37 = vld [vmem:[%s3706_s1 + $0x28] sm:$0xff] }
  0x1d   :  { %v41_v42 = vld [vmem:[%s3706_s1 + $0x20] sm:$0xff]  ;;  %1811 = vmatpush.msra.mxu2 %v45_v39  ;;  %247 = vmatpush.msra.mxu3 %v48_v40  ;;  %v2325_v39 = vld [vmem:[%s3707_s2 + $0xd8] sm:$0xff]  ;;  %v43_v40 = vld [vmem:[%s3706_s1 + $0x30] sm:$0xff] }
  0x1e   :  { %v2108_v44 = vld [vmem:[%s3707_s2 + $0x20] sm:$0xff]  ;;  %393 = vmatpush.msra.mxu0 %v2096_v41  ;;  %125 = vmatpush.msra.mxu1 %v41_v42 }
  0x1f   :  { %v37_v45 = vld [vmem:[%s3706_s1] sm:$0xff]  ;;  %1812 = vmatpush.msra.mxu2 %v41_v42  ;;  %248 = vmatpush.msra.mxu3 %v44_v43  ;;  %v38_v42 = vld [vmem:[%s3706_s1 + $0x8] sm:$0xff]  ;;  %v2337_v43 = vld [vmem:[%s3707_s2 + $0xb8] sm:$0xff] }
  0x20   :  { %v2120_v47 = vld [vmem:[%s3708_s0] sm:$0xff]  ;;  %394 = vmatpush.msra.mxu0 %v2108_v44  ;;  %126 = vmatpush.msra.mxu1 %v37_v45 }
  0x21   :  { %v2126_v48 = vld [vmem:[%s3708_s0 + $0x20] sm:$0xff]  ;;  %1813 = vmatpush.msra.mxu2 %v37_v45  ;;  %249 = vmatpush.msra.mxu3 %v40_v46  ;;  %v39_v45 = vld [vmem:[%s3706_s1 + $0x10] sm:$0xff]  ;;  %v2347_v46 = vld [vmem:[%s3707_s2 + $0x1e8] sm:$0xff] }
  0x22   :  { %127 = vmatmul.f32.vlgmr.msra.gmra.mxu1 %v2120_v47  ;;  %v2138_v51 = vld [vmem:[%s3707_s2] sm:$0xff]  ;;  %139 = vmatmul.f32.vlgmr.msra.gmra.mxu2 %v2126_v48 }
  0x23   :  { %152 = vmatpush.msrb.mxu1 %v98_v49  ;;  %193 = vmatpush.msrb.mxu2 %v99_v50  ;;  %v2360_v49 = vld [vmem:[%s3707_s2 + $0x1c8] sm:$0xff]  ;;  %v2372_v50 = vld [vmem:[%s3707_s2 + $0x1d0] sm:$0xff] }
  0x24   :  { %250 = vmatmul.f32.vlgmr.msra.gmra.mxu3 %v2120_v47  ;;  %395 = vmatpush.msra.mxu0 %v2138_v51 }
  0x25   :  { %153 = vmatpush.msrb.mxu1 %v94_v52  ;;  %194 = vmatpush.msrb.mxu2 %v95_v53  ;;  %v2379_v52 = vld [vmem:[%s3707_s2 + $0x1a8] sm:$0xff]  ;;  %v2390_v53 = vld [vmem:[%s3707_s2 + $0x1b0] sm:$0xff] }
  0x26   :  { %396 = vmatmul.f32.vlgmr.msra.gmra.mxu0 %v1896_v57  ;;  %440 = vmatpush.msrb.mxu3 %v2154_v55 }
  0x27   :  { %154 = vmatpush.msrb.mxu1 %v90_v54  ;;  %195 = vmatpush.msrb.mxu2 %v91_v56  ;;  %v2397_v54 = vld [vmem:[%s3707_s2 + $0x188] sm:$0xff]  ;;  %v2402_v56 = vld [vmem:[%s3707_s2 + $0x58] sm:$0xff] }
  0x28   :  { %554 = vmatpush.msrb.mxu0 %v1947_v4  ;;  %441 = vmatpush.msrb.mxu3 %v2167_v59  ;;  %v74_v4 = vld [vmem:[%s3706_s1 + $0x128] sm:$0xff] }
  0x29   :  { %155 = vmatpush.msrb.mxu1 %v86_v58  ;;  %196 = vmatpush.msrb.mxu2 %v87_v60  ;;  %v2409_v58 = vld [vmem:[%s3707_s2 + $0x190] sm:$0xff]  ;;  %v2416_v60 = vld [vmem:[%s3707_s2 + $0x168] sm:$0xff] }
  0x2a   :  { %130 = vmatmul.f32.gmra.mxu1 %v2175_v61  ;;  %142 = vmatmul.f32.gmra.mxu2 %v2181_v62 }
  0x2b   :  { %156 = vmatpush.msrb.mxu1 %v82_v63  ;;  %197 = vmatpush.msrb.mxu2 %v83_v0  ;;  %v2431_v63 = vld [vmem:[%s3707_s2 + $0x148] sm:$0xff]  ;;  %v2443_v0 = vld [vmem:[%s3707_s2 + $0x150] sm:$0xff] }
  0x2c   :  { %253 = vmatmul.f32.gmra.mxu3 %v2175_v61  ;;  %555 = vmatpush.msrb.mxu0 %v1956_v6  ;;  %v66_v6 = vld [vmem:[%s3706_s1 + $0xe8] sm:$0xff] }
  0x2d   :  { %157 = vmatpush.msrb.mxu1 %v78_v1  ;;  %442 = vmatpush.msrb.mxu3 %v2198_v2  ;;  %v2450_v1 = vld [vmem:[%s3707_s2 + $0x128] sm:$0xff] }
  0x2e   :  { %198 = vmatpush.msrb.mxu2 %v79_v3  ;;  %556 = vmatpush.msrb.mxu0 %v1964_v8  ;;  %v63_v8 = vld [vmem:[%s3706_s1 + $0xd0] sm:$0xff] }
  0x2f   :  { %158 = vmatpush.msrb.mxu1 %v74_v4  ;;  %443 = vmatpush.msrb.mxu3 %v2211_v5  ;;  %v2461_v3 = vld [vmem:[%s3707_s2 + $0x130] sm:$0xff]  ;;  %v2468_v4 = vld [vmem:[%s3707_s2 + $0x108] sm:$0xff] }
  0x30   :  { %199 = vmatpush.msrb.mxu2 %v75_v7  ;;  %557 = vmatpush.msrb.mxu0 %v1976_v11  ;;  %v50_v11 = vld [vmem:[%s3706_s1 + $0x68] sm:$0xff]  ;;  %v2475_v7 = vld [vmem:[%s3707_s2 + $0x110] sm:$0xff] }
  0x31   :  { %159 = vmatpush.msrb.mxu1 %v70_v9  ;;  %444 = vmatpush.msrb.mxu3 %v2223_v10  ;;  %v2482_v9 = vld [vmem:[%s3707_s2 + $0xe8] sm:$0xff] }
  0x32   :  { %200 = vmatpush.msrb.mxu2 %v71_v12  ;;  %133 = vmatmul.f32.gmra.mxu1 %v2232_v13  ;;  %v2497_v12 = vld [vmem:[%s3707_s2 + $0xc8] sm:$0xff] }
  0x33   :  { %145 = vmatmul.f32.gmra.mxu2 %v2238_v15  ;;  %160 = vmatpush.msrb.mxu1 %v66_v6  ;;  %v2504_v6 = vld [vmem:[%s3707_s2 + $0xd0] sm:$0xff] }
  0x34   :  { %201 = vmatpush.msrb.mxu2 %v67_v16  ;;  %256 = vmatmul.f32.gmra.mxu3 %v2232_v13  ;;  %v2524_v16 = vld [vmem:[%s3707_s2 + $0x88] sm:$0xff] }
  0x35   :  { %161 = vmatpush.msrb.mxu1 %v62_v18  ;;  %445 = vmatpush.msrb.mxu3 %v2255_v19  ;;  %v2531_v18 = vld [vmem:[%s3707_s2 + $0x90] sm:$0xff] }
  0x36   :  { %202 = vmatpush.msrb.mxu2 %v63_v8  ;;  %558 = vmatpush.msrb.mxu0 %v1988_v14  ;;  %v47_v14 = vld [vmem:[%s3706_s1 + $0x50] sm:$0xff]  ;;  %v2538_v8 = vld [vmem:[%s3707_s2 + $0x68] sm:$0xff] }
  0x37   :  { %162 = vmatpush.msrb.mxu1 %v58_v21  ;;  %446 = vmatpush.msrb.mxu3 %v2268_v22  ;;  %v2553_v21 = vld [vmem:[%s3707_s2 + $0x48] sm:$0xff] }
  0x38   :  { %203 = vmatpush.msrb.mxu2 %v59_v24  ;;  %559 = vmatpush.msrb.mxu0 %v2000_v17  ;;  %v2353_v17 = vld [vmem:[%s3707_s2 + $0x1f0] sm:$0xff]  ;;  %v2567_v24 = vld [vmem:[%s3707_s2 + $0x28] sm:$0xff] }
  0x39   :  { %163 = vmatpush.msrb.mxu1 %v54_v25  ;;  %447 = vmatpush.msrb.mxu3 %v2280_v27  ;;  %v2573_v25 = vld [vmem:[%s3707_s2 + $0x30] sm:$0xff] }
  0x3a   :  { %204 = vmatpush.msrb.mxu2 %v55_v28  ;;  %136 = vmatmul.f32.gmra.mxu1 %v2289_v30  ;;  %v2580_v28 = vld [vmem:[%s3707_s2 + $0x8] sm:$0xff] }
  0x3b   :  { %148 = vmatmul.f32.gmra.mxu2 %v2295_v31  ;;  %164 = vmatpush.msrb.mxu1 %v50_v11 }
  0x3c   :  { %205 = vmatpush.msrb.mxu2 %v51_v33  ;;  %259 = vmatmul.f32.gmra.mxu3 %v2289_v30 }
  0x3d   :  { %165 = vmatpush.msrb.mxu1 %v46_v34  ;;  %448 = vmatpush.msrb.mxu3 %v2312_v36 }
  0x3e   :  { %206 = vmatpush.msrb.mxu2 %v47_v14  ;;  %560 = vmatpush.msrb.mxu0 %v2012_v20  ;;  %v2365_v20 = vld [vmem:[%s3707_s2 + $0x98] sm:$0xff] }
  0x3f   :  { %166 = vmatpush.msrb.mxu1 %v42_v37  ;;  %449 = vmatpush.msrb.mxu3 %v2325_v39 }
  0x40   :  { %207 = vmatpush.msrb.mxu2 %v43_v40  ;;  %561 = vmatpush.msrb.mxu0 %v2024_v23  ;;  %v2423_v23 = vld [vmem:[%s3707_s2 + $0x170] sm:$0xff] }
  0x41   :  { %167 = vmatpush.msrb.mxu1 %v38_v42  ;;  %450 = vmatpush.msrb.mxu3 %v2337_v43 }
  0x42   :  { %208 = vmatpush.msrb.mxu2 %v39_v45  ;;  %168 = vmatmul.f32.vlgmr.msrb.gmra.mxu1 %v2120_v47 }
  0x43   :  { %209 = vmatmul.f32.vlgmr.msrb.gmra.mxu2 %v2120_v47  ;;  %400 = vmatpush.msra.mxu1 %v2347_v46  ;;  %v2384_v47 = vld [vmem:[%s3707_s2 + $0x78] sm:$0xff] }
  0x44   :  { %262 = vmatmul.f32.gmra.mxu3 %v2126_v48  ;;  %420 = vmatpush.msra.mxu2 %v2353_v17 }
  0x45   :  { %401 = vmatpush.msra.mxu1 %v2360_v49  ;;  %451 = vmatpush.msrb.mxu3 %v2365_v20 }
  0x46   :  { %421 = vmatpush.msra.mxu2 %v2372_v50  ;;  %562 = vmatpush.msrb.mxu0 %v2036_v26  ;;  %v2436_v26 = vld [vmem:[%s3707_s2 + $0x38] sm:$0xff] }
  0x47   :  { %402 = vmatpush.msra.mxu1 %v2379_v52  ;;  %452 = vmatpush.msrb.mxu3 %v2384_v47 }
  0x48   :  { %422 = vmatpush.msra.mxu2 %v2390_v53  ;;  %563 = vmatpush.msrb.mxu0 %v2048_v29  ;;  %v2489_v29 = vld [vmem:[%s3707_s2 + $0xf0] sm:$0xff] }
  0x49   :  { %403 = vmatpush.msra.mxu1 %v2397_v54  ;;  %453 = vmatpush.msrb.mxu3 %v2402_v56 }
  0x4a   :  { %171 = vmatmul.f32.gmra.mxu1 %v2175_v61  ;;  %423 = vmatpush.msra.mxu2 %v2409_v58 }
  0x4b   :  { %212 = vmatmul.f32.gmra.mxu2 %v2175_v61  ;;  %404 = vmatpush.msra.mxu1 %v2416_v60  ;;  %v2455_v61 = vld [vmem:[%s3707_s2 + $0x18] sm:$0xff] }
  0x4c   :  { %265 = vmatmul.f32.gmra.mxu3 %v2181_v62  ;;  %424 = vmatpush.msra.mxu2 %v2423_v23 }
  0x4d   :  { %405 = vmatpush.msra.mxu1 %v2431_v63  ;;  %454 = vmatpush.msrb.mxu3 %v2436_v26 }
  0x4e   :  { %425 = vmatpush.msra.mxu2 %v2443_v0  ;;  %564 = vmatpush.msrb.mxu0 %v2060_v32  ;;  %v2511_v32 = vld [vmem:[%s3707_s2 + $0xa8] sm:$0xff] }
  0x4f   :  { %406 = vmatpush.msra.mxu1 %v2450_v1  ;;  %455 = vmatpush.msrb.mxu3 %v2455_v61 }
  0x50   :  { %426 = vmatpush.msra.mxu2 %v2461_v3  ;;  %565 = vmatpush.msrb.mxu0 %v2072_v35  ;;  %v2545_v35 = vld [vmem:[%s3707_s2 + $0x70] sm:$0xff] }
  0x51   :  { %614 = vmatpush.msra.mxu3 %v2154_v55  ;;  %407 = vmatpush.msra.mxu1 %v2468_v4 }
  0x52   :  { %174 = vmatmul.f32.gmra.mxu1 %v2232_v13  ;;  %427 = vmatpush.msra.mxu2 %v2475_v7 }
  0x53   :  { %215 = vmatmul.f32.gmra.mxu2 %v2232_v13  ;;  %408 = vmatpush.msra.mxu1 %v2482_v9  ;;  %v2517_v13 = vld [vmem:[%s3707_s2 + $0xb0] sm:$0xff] }
  0x54   :  { %268 = vmatmul.f32.gmra.mxu3 %v2238_v15  ;;  %428 = vmatpush.msra.mxu2 %v2489_v29 }
  0x55   :  { %409 = vmatpush.msra.mxu1 %v2497_v12  ;;  %615 = vmatpush.msra.mxu3 %v2167_v59 }
  0x56   :  { %429 = vmatpush.msra.mxu2 %v2504_v6  ;;  %566 = vmatpush.msrb.mxu0 %v2084_v38  ;;  %v2560_v38 = vld [vmem:[%s3707_s2 + $0x50] sm:$0xff] }
  0x57   :  { %410 = vmatpush.msra.mxu1 %v2511_v32  ;;  %616 = vmatpush.msra.mxu3 %v2198_v2 }
  0x58   :  { %430 = vmatpush.msra.mxu2 %v2517_v13  ;;  %567 = vmatpush.msrb.mxu0 %v2096_v41 }
  0x59   :  { %411 = vmatpush.msra.mxu1 %v2524_v16  ;;  %617 = vmatpush.msra.mxu3 %v2211_v5 }
  0x5a   :  { %177 = vmatmul.f32.gmra.mxu1 %v2289_v30  ;;  %431 = vmatpush.msra.mxu2 %v2531_v18 }
  0x5b   :  { %218 = vmatmul.f32.gmra.mxu2 %v2289_v30  ;;  %412 = vmatpush.msra.mxu1 %v2538_v8  ;;  %v2587_v30 = vld [vmem:[%s3707_s2 + $0x10] sm:$0xff] }
  0x5c   :  { %271 = vmatmul.f32.gmra.mxu3 %v2295_v31  ;;  %432 = vmatpush.msra.mxu2 %v2545_v35 }
  0x5d   :  { %413 = vmatpush.msra.mxu1 %v2553_v21  ;;  %618 = vmatpush.msra.mxu3 %v2223_v10 }
  0x5e   :  { %433 = vmatpush.msra.mxu2 %v2560_v38  ;;  %568 = vmatpush.msrb.mxu0 %v2108_v44  ;;  %v101_v44 = vld [vmem:[%s3709_s3] sm:$0xf] }
  0x5f   :  { %414 = vmatpush.msra.mxu1 %v2567_v24  ;;  %619 = vmatpush.msra.mxu3 %v2255_v19 }
  0x60   :  { %434 = vmatpush.msra.mxu2 %v2573_v25  ;;  %569 = vmatpush.msrb.mxu0 %v2138_v51 }
  0x61   :  { %415 = vmatpush.msra.mxu1 %v2580_v28  ;;  %620 = vmatpush.msra.mxu3 %v2268_v22 }
  0x62   :  { %180 = vmatmul.f32.gmra.mxu1 %v2126_v48  ;;  %435 = vmatpush.msra.mxu2 %v2587_v30 }
  0x63   :  { %221 = vmatmul.f32.gmra.mxu2 %v2126_v48  ;;  %574 = vmatpush.msrb.mxu1 %v2347_v46  ;;  %v103_v48 = vperm.slane %v101_v44, 0 }
  0x64   :  { %456 = vmatmul.f32.vlgmr.msrb.gmra.mxu3 %v1896_v57  ;;  %594 = vmatpush.msrb.mxu2 %v2353_v17 }
  0x65   :  { %575 = vmatpush.msrb.mxu1 %v2360_v49  ;;  %621 = vmatpush.msra.mxu3 %v2280_v27 }
  0x66   :  { %595 = vmatpush.msrb.mxu2 %v2372_v50 }
  0x67   :  { %576 = vmatpush.msrb.mxu1 %v2379_v52  ;;  %622 = vmatpush.msra.mxu3 %v2312_v36 }
  0x68   :  { %596 = vmatpush.msrb.mxu2 %v2390_v53 }
  0x69   :  { %577 = vmatpush.msrb.mxu1 %v2397_v54  ;;  %623 = vmatpush.msra.mxu3 %v2325_v39 }
  0x6a   :  { %183 = vmatmul.f32.gmra.mxu1 %v2181_v62  ;;  %597 = vmatpush.msrb.mxu2 %v2409_v58 }
  0x6b   :  { %224 = vmatmul.f32.gmra.mxu2 %v2181_v62  ;;  %578 = vmatpush.msrb.mxu1 %v2416_v60 }
  0x6c   :  { %598 = vmatpush.msrb.mxu2 %v2423_v23  ;;  %624 = vmatpush.msra.mxu3 %v2337_v43 }
  0x6d   :  { %579 = vmatpush.msrb.mxu1 %v2431_v63 }
  0x6e   :  { %599 = vmatpush.msrb.mxu2 %v2443_v0  ;;  %625 = vmatpush.msra.mxu3 %v2365_v20 }
  0x6f   :  { %580 = vmatpush.msrb.mxu1 %v2450_v1 }
  0x70   :  { %600 = vmatpush.msrb.mxu2 %v2461_v3  ;;  %626 = vmatpush.msra.mxu3 %v2384_v47 }
  0x71   :  { %581 = vmatpush.msrb.mxu1 %v2468_v4 }
  0x72   :  { %186 = vmatmul.f32.gmra.mxu1 %v2238_v15  ;;  %601 = vmatpush.msrb.mxu2 %v2475_v7 }
  0x73   :  { %227 = vmatmul.f32.gmra.mxu2 %v2238_v15  ;;  %582 = vmatpush.msrb.mxu1 %v2482_v9 }
  0x74   :  { %602 = vmatpush.msrb.mxu2 %v2489_v29  ;;  %627 = vmatpush.msra.mxu3 %v2402_v56 }
  0x75   :  { %583 = vmatpush.msrb.mxu1 %v2497_v12 }
  0x76   :  { %603 = vmatpush.msrb.mxu2 %v2504_v6  ;;  %628 = vmatpush.msra.mxu3 %v2436_v26 }
  0x77   :  { %584 = vmatpush.msrb.mxu1 %v2511_v32 }
  0x78   :  { %604 = vmatpush.msrb.mxu2 %v2517_v13  ;;  %629 = vmatpush.msra.mxu3 %v2455_v61 }
  0x79   :  { %585 = vmatpush.msrb.mxu1 %v2524_v16 }
  0x7a   :  { %789 = vmatpush.msrb.mxu3 %v2154_v55  ;;  %189 = vmatmul.f32.gmra.mxu1 %v2295_v31 }
  0x7b   :  { %605 = vmatpush.msrb.mxu2 %v2531_v18  ;;  %586 = vmatpush.msrb.mxu1 %v2538_v8 }
  0x7c   :  { %230 = vmatmul.f32.gmra.mxu2 %v2295_v31  ;;  %790 = vmatpush.msrb.mxu3 %v2167_v59 }
  0x7d   :  { %606 = vmatpush.msrb.mxu2 %v2545_v35  ;;  %587 = vmatpush.msrb.mxu1 %v2553_v21 }
  0x7e   :  { %791 = vmatpush.msrb.mxu3 %v2198_v2 }
  0x7f   :  { %607 = vmatpush.msrb.mxu2 %v2560_v38  ;;  %588 = vmatpush.msrb.mxu1 %v2567_v24 }
  0x80   :  { %792 = vmatpush.msrb.mxu3 %v2211_v5  ;;  %v2707_v5 = vperm.slane %v101_v44, 3 }
  0x81   :  { %608 = vmatpush.msrb.mxu2 %v2573_v25  ;;  %589 = vmatpush.msrb.mxu1 %v2580_v28 }
  0x82   :  { %416 = vmatmul.f32.vlgmr.msra.gmra.mxu1 %v1896_v57  ;;  %793 = vmatpush.msrb.mxu3 %v2223_v10 }
  0x83   :  { %609 = vmatpush.msrb.mxu2 %v2587_v30  ;;  %749 = vmatpush.msra.mxu1 %v2347_v46 }
  0x84   :  { %436 = vmatmul.f32.vlgmr.msra.gmra.mxu2 %v1896_v57  ;;  %794 = vmatpush.msrb.mxu3 %v2255_v19 }
  0x85   :  { %769 = vmatpush.msra.mxu2 %v2353_v17  ;;  %750 = vmatpush.msra.mxu1 %v2360_v49  ;;  %v104_v49 = vperm.slane %v101_v44, 1 }
  0x86   :  { %795 = vmatpush.msrb.mxu3 %v2268_v22 }
  0x87   :  { %770 = vmatpush.msra.mxu2 %v2372_v50  ;;  %751 = vmatpush.msra.mxu1 %v2379_v52 }
  0x88   :  { %796 = vmatpush.msrb.mxu3 %v2280_v27 }
  0x89   :  { %771 = vmatpush.msra.mxu2 %v2390_v53  ;;  %752 = vmatpush.msra.mxu1 %v2397_v54  ;;  %v105_v54 = vperm.slane %v101_v44, 2 }
  0x8a   :  { %797 = vmatpush.msrb.mxu3 %v2312_v36 }
  0x8b   :  { %772 = vmatpush.msra.mxu2 %v2409_v58  ;;  %753 = vmatpush.msra.mxu1 %v2416_v60 }
  0x8c   :  { %798 = vmatpush.msrb.mxu3 %v2325_v39 }
  0x8d   :  { %773 = vmatpush.msra.mxu2 %v2423_v23  ;;  %754 = vmatpush.msra.mxu1 %v2431_v63 }
  0x8e   :  { %799 = vmatpush.msrb.mxu3 %v2337_v43 }
  0x8f   :  { %774 = vmatpush.msra.mxu2 %v2443_v0  ;;  %755 = vmatpush.msra.mxu1 %v2450_v1 }
  0x90   :  { %800 = vmatpush.msrb.mxu3 %v2365_v20 }
  0x91   :  { %775 = vmatpush.msra.mxu2 %v2461_v3  ;;  %756 = vmatpush.msra.mxu1 %v2468_v4 }
  0x92   :  { %801 = vmatpush.msrb.mxu3 %v2384_v47 }
  0x93   :  { %776 = vmatpush.msra.mxu2 %v2475_v7  ;;  %757 = vmatpush.msra.mxu1 %v2482_v9 }
  0x94   :  { %802 = vmatpush.msrb.mxu3 %v2402_v56 }
  0x95   :  { %777 = vmatpush.msra.mxu2 %v2489_v29  ;;  %758 = vmatpush.msra.mxu1 %v2497_v12 }
  0x96   :  { %803 = vmatpush.msrb.mxu3 %v2436_v26 }
  0x97   :  { %778 = vmatpush.msra.mxu2 %v2504_v6  ;;  %759 = vmatpush.msra.mxu1 %v2511_v32 }
  0x98   :  { %804 = vmatpush.msrb.mxu3 %v2455_v61 }
  0x99   :  { %779 = vmatpush.msra.mxu2 %v2517_v13  ;;  %760 = vmatpush.msra.mxu1 %v2524_v16 }
  0x9b   :  { %780 = vmatpush.msra.mxu2 %v2531_v18  ;;  %761 = vmatpush.msra.mxu1 %v2538_v8 }
  0x9d   :  { %781 = vmatpush.msra.mxu2 %v2545_v35  ;;  %762 = vmatpush.msra.mxu1 %v2553_v21 }
  0x9f   :  { %782 = vmatpush.msra.mxu2 %v2560_v38  ;;  %v2692_v41 = vpop.f32.mrf.mxu1  ;;  %763 = vmatpush.msra.mxu1 %v2567_v24 }
  0xa1   :  { %783 = vmatpush.msra.mxu2 %v2573_v25  ;;  %764 = vmatpush.msra.mxu1 %v2580_v28  ;;  %v129_v28 = vadd.f32 %v2692_v41, %v103_v48 }
  0xa3   :  { %784 = vmatpush.msra.mxu2 %v2587_v30  ;;  %v397_v30 = vpop.f32.mrf.mxu0 }
  0xa5   :  { %v140_v51 = vpop.f32.mrf.mxu2 }
  0xa6   :  { %v2701_v57 = vadd.f32 %v140_v51, %v103_v48 }
  0xa7   :  { %v2703_v59 = vpop.f32.mrf.mxu3  ;;  %v131_v62 = vpop.f32.mrf.mxu1 }
  0xa8   :  { %3731 = vst [vmem:[#allocation6_spill] sm:$0xff] %v2701_v57  ;;  %v2705_v2 = vadd.f32 %v131_v62, %v103_v48  ;;  %v3154_v57 = vld [vmem:[%s3707_s2 + $0x58] sm:$0xff] }
  0xad   :  { %v143_v10 = vpop.f32.mrf.mxu2 }
  0xae   :  { %v2709_v15 = vadd.f32 %v143_v10, %v103_v48 }
  0xaf   :  { %v254_v19 = vpop.f32.mrf.mxu3  ;;  %v134_v22 = vpop.f32.mrf.mxu1 }
  0xb0   :  { %3732 = vst [vmem:[#allocation7_spill] sm:$0xff] %v2709_v15  ;;  %v2712_v27 = vadd.f32 %v254_v19, %v2707_v5  ;;  %v2714_v31 = vadd.f32 %v134_v22, %v103_v48  ;;  %v460_v19 = vadd.f32 %v397_v30, %v129_v28  ;;  %v2792_v30 = vld [vmem:[%s3707_s2 + $0x1c0] sm:$0xff]  ;;  %v3131_v15 = vld [vmem:[%s3707_s2 + $0x70] sm:$0xff] }
  0xb2   :  { %v464_v22 = vmul.f32 0.5, %v460_v19  ;;  %v2828_v19 = vld [vmem:[%s3707_s2 + $0x100] sm:$0xff] }
  0xb3   :  { %3754 = vst [vmem:[#allocation29_spill] sm:$0xff] %v2828_v19 }
  0xb4   :  { %1816 = vtanh.f32 %v464_v22  ;;  %v2834_v22 = vld [vmem:[%s3707_s2 + $0xe0] sm:$0xff] }
  0xb5   :  { %3755 = vst [vmem:[#allocation30_spill] sm:$0xff] %v2834_v22 }
  0xb6   :  { %v146_v11 = vpop.f32.mrf.mxu2 }
  0xb7   :  { %v2716_v33 = vadd.f32 %v146_v11, %v103_v48  ;;  %v257_v34 = vpop.f32.mrf.mxu3  ;;  %v137_v36 = vpop.f32.mrf.mxu1 }
  0xb8   :  { %v2719_v14 = vadd.f32 %v257_v34, %v2707_v5  ;;  %v2721_v37 = vadd.f32 %v137_v36, %v103_v48  ;;  %v2770_v36 = vld [vmem:[%s3707_s2 + $0x1e0] sm:$0xff] }
  0xb9   :  { %3733 = vst [vmem:[#allocation8_spill] sm:$0xff] %v2716_v33  ;;  %729 = vmatpush.msra.mxu0 %v2770_v36  ;;  %v3108_v33 = vld [vmem:[%s3707_s2 + $0x88] sm:$0xff] }
  0xba   :  { %3734 = vst [vmem:[#allocation9_spill] sm:$0xff] %v2721_v37  ;;  %v3180_v37 = vld [vmem:[%s3707_s2 + $0x8] sm:$0xff] }
  0xbb   :  { %730 = vmatpush.msra.mxu0 %v2792_v30  ;;  %3765 = vst [vmem:[#allocation40_spill] sm:$0xff] %v3180_v37 }
  0xbe   :  { %v149_v39 = vpop.f32.mrf.mxu2 }
  0xbf   :  { %v2723_v40 = vadd.f32 %v149_v39, %v103_v48  ;;  %v260_v42 = vpop.f32.mrf.mxu3  ;;  %v169_v43 = vpop.f32.mrf.mxu1 }
  0xc0   :  { %v2726_v45 = vadd.f32 %v260_v42, %v2707_v5  ;;  %v170_v11 = vadd.f32 %v169_v43, %v104_v49 }
  0xc1   :  { %3735 = vst [vmem:[#allocation10_spill] sm:$0xff] %v2723_v40  ;;  %v3072_v40 = vld [vmem:[%s3707_s2 + $0xc8] sm:$0xff] }
  0xc2   :  { %3736 = vst [vmem:[#allocation11_spill] sm:$0xff] %v2726_v45  ;;  %v3162_v45 = vld [vmem:[%s3707_s2 + $0x28] sm:$0xff] }
  0xc6   :  { %v210_v20 = vpop.f32.mrf.mxu2 }
  0xc7   :  { %v263_v50 = vpop.f32.mrf.mxu3  ;;  %v172_v52 = vpop.f32.mrf.mxu1  ;;  %v211_v43 = vadd.f32 %v210_v20, %v105_v54 }
  0xc8   :  { %v2729_v47 = vadd.f32 %v263_v50, %v2707_v5  ;;  %v2731_v53 = vadd.f32 %v172_v52, %v104_v49  ;;  %v252_v50 = vadd.f32 %v2703_v59, %v2707_v5 }
  0xca   :  { %3737 = vst [vmem:[#allocation12_spill] sm:$0xff] %v2729_v47  ;;  %v3136_v47 = vld [vmem:[%s3707_s2 + $0x78] sm:$0xff] }
  0xce   :  { %v213_v56 = vpop.f32.mrf.mxu2 }
  0xcf   :  { %v2733_v58 = vadd.f32 %v213_v56, %v105_v54  ;;  %v266_v60 = vpop.f32.mrf.mxu3  ;;  %v175_v23 = vpop.f32.mrf.mxu1 }
  0xd0   :  { %v2736_v63 = vadd.f32 %v266_v60, %v2707_v5  ;;  %v2738_v26 = vadd.f32 %v175_v23, %v104_v49  ;;  %v1817_v60 = vpop.eup %1816 }
  0xd2   :  { %3738 = vst [vmem:[#allocation13_spill] sm:$0xff] %v2736_v63  ;;  %v3113_v63 = vld [vmem:[%s3707_s2 + $0x90] sm:$0xff] }
  0xd6   :  { %v216_v0 = vpop.f32.mrf.mxu2 }
  0xd7   :  { %v2740_v1 = vadd.f32 %v216_v0, %v105_v54  ;;  %v269_v61 = vpop.f32.mrf.mxu3  ;;  %v178_v3 = vpop.f32.mrf.mxu1 }
  0xd8   :  { %v2743_v4 = vadd.f32 %v269_v61, %v2707_v5  ;;  %v2745_v7 = vadd.f32 %v178_v3, %v104_v49  ;;  %v466_v3 = vmul.f32 0.5, %v1817_v60 }
  0xda   :  { %3739 = vst [vmem:[#allocation14_spill] sm:$0xff] %v2743_v4  ;;  %v3090_v4 = vld [vmem:[%s3707_s2 + $0xa8] sm:$0xff] }
  0xdb   :  { %3740 = vst [vmem:[#allocation15_spill] sm:$0xff] %v2745_v7  ;;  %v3172_v7 = vld [vmem:[%s3707_s2 + $0x38] sm:$0xff] }
  0xdc   :  { %3764 = vst [vmem:[#allocation39_spill] sm:$0xff] %v3172_v7 }
  0xde   :  { %v219_v9 = vpop.f32.mrf.mxu2 }
  0xdf   :  { %v2747_v29 = vadd.f32 %v219_v9, %v105_v54  ;;  %v272_v12 = vpop.f32.mrf.mxu3  ;;  %v181_v6 = vpop.f32.mrf.mxu1 }
  0xe0   :  { %v2750_v32 = vadd.f32 %v272_v12, %v2707_v5  ;;  %v2752_v13 = vadd.f32 %v181_v6, %v104_v49  ;;  %v467_v6 = vadd.f32 0.5, %v466_v3 }
  0xe1   :  { %3741 = vst [vmem:[#allocation16_spill] sm:$0xff] %v2747_v29  ;;  %v3167_v29 = vld [vmem:[%s3707_s2 + $0x30] sm:$0xff] }
  0xe2   :  { %3742 = vst [vmem:[#allocation17_spill] sm:$0xff] %v2750_v32  ;;  %v3054_v32 = vld [vmem:[%s3707_s2 + $0xe8] sm:$0xff] }
  0xe3   :  { %3743 = vst [vmem:[#allocation18_spill] sm:$0xff] %v2752_v13  ;;  %v3149_v13 = vld [vmem:[%s3707_s2 + $0x50] sm:$0xff] }
  0xe6   :  { %v222_v16 = vpop.f32.mrf.mxu2 }
  0xe7   :  { %v2754_v18 = vadd.f32 %v222_v16, %v105_v54  ;;  %v184_v8 = vpop.f32.mrf.mxu1  ;;  %v457_v48 = vpop.f32.mrf.mxu3 }
  0xe8   :  { %v2756_v35 = vadd.f32 %v184_v8, %v104_v49  ;;  %v463_v56 = vadd.f32 %v457_v48, %v252_v50  ;;  %v2864_v48 = vld [vmem:[%s3707_s2 + $0x40] sm:$0xff] }
  0xe9   :  { %3744 = vst [vmem:[#allocation19_spill] sm:$0xff] %v2754_v18  ;;  %v2870_v50 = vld [vmem:[%s3707_s2 + $0x20] sm:$0xff]  ;;  %v3144_v18 = vld [vmem:[%s3707_s2 + $0x48] sm:$0xff] }
  0xea   :  { %3745 = vst [vmem:[#allocation20_spill] sm:$0xff] %v2756_v35  ;;  %v473_v0 = vmul.f32 0.5, %v463_v56  ;;  %v3126_v35 = vld [vmem:[%s3707_s2 + $0x68] sm:$0xff] }
  0xeb   :  { %3760 = vst [vmem:[#allocation35_spill] sm:$0xff] %v2864_v48 }
  0xec   :  { %3761 = vst [vmem:[#allocation36_spill] sm:$0xff] %v2870_v50 }
  0xee   :  { %v225_v21 = vpop.f32.mrf.mxu2 }
  0xef   :  { %v2758_v38 = vadd.f32 %v225_v21, %v105_v54  ;;  %v187_v24 = vpop.f32.mrf.mxu1 }
  0xf0   :  { %v2760_v25 = vadd.f32 %v187_v24, %v104_v49 }
  0xf1   :  { %3746 = vst [vmem:[#allocation21_spill] sm:$0xff] %v2758_v38  ;;  %v3118_v38 = vld [vmem:[%s3707_s2 + $0x98] sm:$0xff] }
  0xf2   :  { %3747 = vst [vmem:[#allocation22_spill] sm:$0xff] %v2760_v25  ;;  %v3100_v25 = vld [vmem:[%s3707_s2 + $0xb8] sm:$0xff] }
  0xf6   :  { %v228_v44 = vpop.f32.mrf.mxu2 }
  0xf7   :  { %v2763_v51 = vadd.f32 %v228_v44, %v105_v54  ;;  %v190_v62 = vpop.f32.mrf.mxu1  ;;  %v2798_v44 = vld [vmem:[%s3707_s2 + $0x1a0] sm:$0xff] }
  0xf8   :  { %v2765_v10 = vadd.f32 %v190_v62, %v104_v49  ;;  %731 = vmatpush.msra.mxu0 %v2798_v44  ;;  %v2822_v62 = vld [vmem:[%s3707_s2 + $0x120] sm:$0xff] }
  0xf9   :  { %3748 = vst [vmem:[#allocation23_spill] sm:$0xff] %v2763_v51  ;;  %v3095_v51 = vld [vmem:[%s3707_s2 + $0xb0] sm:$0xff] }
  0xfa   :  { %3749 = vst [vmem:[#allocation24_spill] sm:$0xff] %v2765_v10  ;;  %v3064_v10 = vld [vmem:[%s3707_s2 + $0xf8] sm:$0xff] }
  0xfb   :  { %3753 = vst [vmem:[#allocation28_spill] sm:$0xff] %v2822_v62 }
  0xff   :  { %v231_v34 = vpop.f32.mrf.mxu2  ;;  %v417_v42 = vpop.f32.mrf.mxu1 }
 0x100   :  { %v2772_v39 = vadd.f32 %v231_v34, %v105_v54  ;;  %v461_v41 = vadd.f32 %v417_v42, %v170_v11  ;;  %v2840_v11 = vld [vmem:[%s3707_s2 + $0xc0] sm:$0xff] }
 0x101   :  { %3756 = vst [vmem:[#allocation31_spill] sm:$0xff] %v2840_v11  ;;  %v2846_v34 = vld [vmem:[%s3707_s2 + $0xa0] sm:$0xff] }
 0x102   :  { %3750 = vst [vmem:[#allocation25_spill] sm:$0xff] %v2772_v39  ;;  %v468_v52 = vmul.f32 0.5, %v461_v41  ;;  %v2852_v42 = vld [vmem:[%s3707_s2 + $0x80] sm:$0xff]  ;;  %v3059_v39 = vld [vmem:[%s3707_s2 + $0xf0] sm:$0xff] }
 0x103   :  { %3757 = vst [vmem:[#allocation32_spill] sm:$0xff] %v2846_v34  ;;  %v2858_v41 = vld [vmem:[%s3707_s2 + $0x60] sm:$0xff] }
 0x104   :  { %1818 = vtanh.f32 %v468_v52  ;;  %3758 = vst [vmem:[#allocation33_spill] sm:$0xff] %v2852_v42  ;;  %v2876_v52 = vld [vmem:[%s3707_s2] sm:$0xff] }
 0x105   :  { %3759 = vst [vmem:[#allocation34_spill] sm:$0xff] %v2858_v41 }
 0x106   :  { %3762 = vst [vmem:[#allocation37_spill] sm:$0xff] %v2876_v52 }
 0x107   :  { %v437_v49 = vpop.f32.mrf.mxu2 }
 0x108   :  { %v462_v23 = vadd.f32 %v437_v49, %v211_v43 }
 0x10a   :  { %1820 = vtanh.f32 %v462_v23  ;;  %v1819_v61 = vpop.eup %1818 }
 0x10b   :  { %v470_v9 = vmul.f32 0.5, %v1819_v61  ;;  %1822 = vtanh.f32 %v473_v0 }
 0x10d   :  { %v471_v12 = vadd.f32 0.5, %v470_v9 }
 0x10f   :  { %v477_v8 = vmul.f32 0.0, %v471_v12 }
 0x110   :  { %v1821_v16 = vpop.eup %1820 }
 0x111   :  { %v478_v21 = vmul.f32 %v1821_v16, %v467_v6  ;;  %v1823_v24 = vpop.eup %1822 }
 0x112   :  { %v475_v5 = vmul.f32 0.5, %v1823_v24 }
 0x113   :  { %v2777_v59 = vadd.f32 %v478_v21, %v477_v8 }
 0x114   :  { %v476_v20 = vadd.f32 0.5, %v475_v5 }
 0x115   :  { %1824 = vtanh.f32 %v2777_v59 }
 0x11b   :  { %v1825_v54 = vpop.eup %1824 }
 0x11c   :  { %v2780_v28 = vmul.f32 %v1825_v54, %v476_v20 }
 0x11e   :  { %3751 = vst [vmem:[#allocation26_spill] sm:$0xff] %v2780_v28  ;;  %570 = vmatmul.f32.vlgmr.msrb.gmra.mxu0 %v2780_v28  ;;  %590 = vmatmul.f32.vlgmr.msrb.gmra.mxu1 %v2780_v28 }
 0x11f   :  { %610 = vmatmul.f32.vlgmr.msrb.gmra.mxu2 %v2780_v28  ;;  %630 = vmatmul.f32.vlgmr.msra.gmra.mxu3 %v2780_v28  ;;  %v3082_v28 = vld [vmem:[%s3707_s2 + $0xd8] sm:$0xff] }
 0x120   :  { %924 = vmatpush.msrb.mxu1 %v2347_v46  ;;  %944 = vmatpush.msrb.mxu2 %v2353_v17  ;;  %v2804_v46 = vld [vmem:[%s3707_s2 + $0x180] sm:$0xff] }
 0x121   :  { %964 = vmatpush.msra.mxu3 %v2154_v55  ;;  %732 = vmatpush.msra.mxu0 %v2804_v46  ;;  %v2810_v55 = vld [vmem:[%s3707_s2 + $0x160] sm:$0xff] }
 0x122   :  { %v2816_v17 = vld [vmem:[%s3707_s2 + $0x140] sm:$0xff] }
 0x123   :  { %733 = vmatpush.msra.mxu0 %v2810_v55  ;;  %3752 = vst [vmem:[#allocation27_spill] sm:$0xff] %v2816_v17 }
 0x125   :  { %734 = vmatpush.msra.mxu0 %v2816_v17 }
 0x127   :  { %735 = vmatpush.msra.mxu0 %v2822_v62 }
 0x129   :  { %736 = vmatpush.msra.mxu0 %v2828_v19 }
 0x12b   :  { %737 = vmatpush.msra.mxu0 %v2834_v22 }
 0x12d   :  { %738 = vmatpush.msra.mxu0 %v2840_v11 }
 0x12f   :  { %739 = vmatpush.msra.mxu0 %v2846_v34 }
 0x131   :  { %740 = vmatpush.msra.mxu0 %v2852_v42 }
 0x133   :  { %741 = vmatpush.msra.mxu0 %v2858_v41 }
 0x135   :  { %742 = vmatpush.msra.mxu0 %v2864_v48 }
 0x137   :  { %743 = vmatpush.msra.mxu0 %v2870_v50 }
 0x139   :  { %744 = vmatpush.msra.mxu0 %v2876_v52 }
 0x13b   :  { %904 = vmatpush.msrb.mxu0 %v2770_v36 }
 0x13d   :  { %905 = vmatpush.msrb.mxu0 %v2792_v30 }
 0x13f   :  { %906 = vmatpush.msrb.mxu0 %v2798_v44 }
 0x141   :  { %907 = vmatpush.msrb.mxu0 %v2804_v46 }
 0x143   :  { %908 = vmatpush.msrb.mxu0 %v2810_v55 }
 0x145   :  { %909 = vmatpush.msrb.mxu0 %v2816_v17 }
 0x147   :  { %910 = vmatpush.msrb.mxu0 %v2822_v62 }
 0x149   :  { %911 = vmatpush.msrb.mxu0 %v2828_v19 }
 0x14b   :  { %912 = vmatpush.msrb.mxu0 %v2834_v22 }
 0x14d   :  { %913 = vmatpush.msrb.mxu0 %v2840_v11 }
 0x14f   :  { %914 = vmatpush.msrb.mxu0 %v2846_v34 }
 0x151   :  { %915 = vmatpush.msrb.mxu0 %v2852_v42 }
 0x153   :  { %916 = vmatpush.msrb.mxu0 %v2858_v41 }
 0x155   :  { %917 = vmatpush.msrb.mxu0 %v2864_v48 }
 0x157   :  { %918 = vmatpush.msrb.mxu0 %v2870_v50 }
 0x159   :  { %919 = vmatpush.msrb.mxu0 %v2876_v52 }
 0x19b   :  { %v571_v56 = vpop.f32.mrf.mxu0  ;;  %v591_v43 = vpop.f32.mrf.mxu1 }
 0x19c   :  { %v634_v49 = vadd.f32 %v571_v56, %v2705_v2  ;;  %v635_v60 = vadd.f32 %v591_v43, %v2731_v53 }
 0x19e   :  { %v638_v23 = vmul.f32 0.5, %v634_v49  ;;  %v642_v0 = vmul.f32 0.5, %v635_v60  ;;  %v2928_v60 = vld [vmem:[%s3707_s2 + $0x1c8] sm:$0xff] }
 0x19f   :  { %925 = vmatpush.msrb.mxu1 %v2928_v60 }
 0x1a0   :  { %1826 = vtanh.f32 %v638_v23  ;;  %v2933_v23 = vld [vmem:[%s3707_s2 + $0x1d0] sm:$0xff] }
 0x1a1   :  { %1828 = vtanh.f32 %v642_v0  ;;  %v2938_v0 = vld [vmem:[%s3707_s2 + $0x1d8] sm:$0xff]  ;;  %945 = vmatpush.msrb.mxu2 %v2933_v23 }
 0x1a2   :  { %v611_v61 = vpop.f32.mrf.mxu2  ;;  %v631_v3 = vpop.f32.mrf.mxu3  ;;  %965 = vmatpush.msra.mxu3 %v2938_v0 }
 0x1a3   :  { %v636_v9 = vadd.f32 %v611_v61, %v2733_v58  ;;  %v637_v12 = vadd.f32 %v631_v3, %v2712_v27  ;;  %v2946_v61 = vld [vmem:[%s3707_s2 + $0x1a8] sm:$0xff]  ;;  %v2951_v3 = vld [vmem:[%s3707_s2 + $0x1b0] sm:$0xff] }
 0x1a4   :  { %926 = vmatpush.msrb.mxu1 %v2946_v61  ;;  %946 = vmatpush.msrb.mxu2 %v2951_v3 }
 0x1a5   :  { %1830 = vtanh.f32 %v636_v9  ;;  %v647_v2 = vmul.f32 0.5, %v637_v12  ;;  %v2956_v9 = vld [vmem:[%s3707_s2 + $0x1b8] sm:$0xff]  ;;  %v2964_v12 = vld [vmem:[%s3707_s2 + $0x188] sm:$0xff] }
 0x1a6   :  { %v1827_v53 = vpop.eup %1826  ;;  %966 = vmatpush.msra.mxu3 %v2956_v9  ;;  %927 = vmatpush.msrb.mxu1 %v2964_v12 }
 0x1a7   :  { %v1829_v6 = vpop.eup %1828  ;;  %v640_v16 = vmul.f32 0.5, %v1827_v53  ;;  %1832 = vtanh.f32 %v647_v2  ;;  %v2969_v2 = vld [vmem:[%s3707_s2 + $0x190] sm:$0xff]  ;;  %v2974_v53 = vld [vmem:[%s3707_s2 + $0x198] sm:$0xff] }
 0x1a8   :  { %v644_v8 = vmul.f32 0.5, %v1829_v6  ;;  %947 = vmatpush.msrb.mxu2 %v2969_v2  ;;  %967 = vmatpush.msra.mxu3 %v2974_v53  ;;  %v2982_v6 = vld [vmem:[%s3707_s2 + $0x168] sm:$0xff] }
 0x1a9   :  { %v641_v21 = vadd.f32 0.5, %v640_v16  ;;  %v2987_v16 = vld [vmem:[%s3707_s2 + $0x170] sm:$0xff]  ;;  %928 = vmatpush.msrb.mxu1 %v2982_v6 }
 0x1aa   :  { %v645_v24 = vadd.f32 0.5, %v644_v8  ;;  %v2992_v8 = vld [vmem:[%s3707_s2 + $0x178] sm:$0xff]  ;;  %948 = vmatpush.msrb.mxu2 %v2987_v16 }
 0x1ab   :  { %v1831_v58 = vpop.eup %1830  ;;  %968 = vmatpush.msra.mxu3 %v2992_v8 }
 0x1ac   :  { %v651_v27 = vmul.f32 %v645_v24, %v2777_v59  ;;  %v652_v5 = vmul.f32 %v1831_v58, %v641_v21  ;;  %v3000_v21 = vld [vmem:[%s3707_s2 + $0x148] sm:$0xff]  ;;  %v3005_v24 = vld [vmem:[%s3707_s2 + $0x150] sm:$0xff]  ;;  %v3010_v58 = vld [vmem:[%s3707_s2 + $0x158] sm:$0xff] }
 0x1ad   :  { %v1833_v20 = vpop.eup %1832  ;;  %929 = vmatpush.msrb.mxu1 %v3000_v21  ;;  %949 = vmatpush.msrb.mxu2 %v3005_v24 }
 0x1ae   :  { %v2895_v54 = vadd.f32 %v652_v5, %v651_v27  ;;  %v649_v56 = vmul.f32 0.5, %v1833_v20  ;;  %969 = vmatpush.msra.mxu3 %v3010_v58  ;;  %v3018_v27 = vld [vmem:[%s3707_s2 + $0x128] sm:$0xff]  ;;  %v3023_v5 = vld [vmem:[%s3707_s2 + $0x130] sm:$0xff]  ;;  %v3028_v20 = vld [vmem:[%s3707_s2 + $0x138] sm:$0xff] }
 0x1af   :  { %930 = vmatpush.msrb.mxu1 %v3018_v27  ;;  %950 = vmatpush.msrb.mxu2 %v3023_v5 }
 0x1b0   :  { %1834 = vtanh.f32 %v2895_v54  ;;  %v650_v43 = vadd.f32 0.5, %v649_v56  ;;  %970 = vmatpush.msra.mxu3 %v3028_v20  ;;  %v3036_v56 = vld [vmem:[%s3707_s2 + $0x108] sm:$0xff] }
 0x1b1   :  { %931 = vmatpush.msrb.mxu1 %v3036_v56 }
 0x1b3   :  { %932 = vmatpush.msrb.mxu1 %v3054_v32 }
 0x1b5   :  { %933 = vmatpush.msrb.mxu1 %v3072_v40 }
 0x1b6   :  { %v1835_v49 = vpop.eup %1834 }
 0x1b7   :  { %v2902_v59 = vmul.f32 %v1835_v49, %v650_v43  ;;  %v3041_v43 = vld [vmem:[%s3707_s2 + $0x110] sm:$0xff]  ;;  %v3046_v49 = vld [vmem:[%s3707_s2 + $0x118] sm:$0xff]  ;;  %934 = vmatpush.msrb.mxu1 %v3090_v4 }
 0x1b8   :  { %951 = vmatpush.msrb.mxu2 %v3041_v43  ;;  %971 = vmatpush.msra.mxu3 %v3046_v49 }
 0x1b9   :  { %3763 = vst [vmem:[#allocation38_spill] sm:$0xff] %v2902_v59  ;;  %745 = vmatmul.f32.vlgmr.msra.gmra.mxu0 %v2902_v59  ;;  %765 = vmatmul.f32.vlgmr.msra.gmra.mxu1 %v2902_v59 }
 0x1ba   :  { %785 = vmatmul.f32.vlgmr.msra.gmra.mxu2 %v2902_v59  ;;  %805 = vmatmul.f32.vlgmr.msrb.gmra.mxu3 %v2902_v59  ;;  %v3077_v59 = vld [vmem:[%s3707_s2 + $0xd0] sm:$0xff] }
 0x1bb   :  { %1079 = vmatpush.msra.mxu0 %v2770_v36  ;;  %952 = vmatpush.msrb.mxu2 %v3059_v39 }
 0x1bc   :  { %972 = vmatpush.msra.mxu3 %v3064_v10  ;;  %935 = vmatpush.msrb.mxu1 %v3108_v33 }
 0x1bd   :  { %1080 = vmatpush.msra.mxu0 %v2792_v30  ;;  %953 = vmatpush.msrb.mxu2 %v3077_v59 }
 0x1be   :  { %973 = vmatpush.msra.mxu3 %v3082_v28  ;;  %936 = vmatpush.msrb.mxu1 %v3126_v35 }
 0x1bf   :  { %1081 = vmatpush.msra.mxu0 %v2798_v44  ;;  %954 = vmatpush.msrb.mxu2 %v3095_v51 }
 0x1c0   :  { %974 = vmatpush.msra.mxu3 %v3100_v25  ;;  %937 = vmatpush.msrb.mxu1 %v3144_v18 }
 0x1c1   :  { %1082 = vmatpush.msra.mxu0 %v2804_v46  ;;  %955 = vmatpush.msrb.mxu2 %v3113_v63 }
 0x1c2   :  { %975 = vmatpush.msra.mxu3 %v3118_v38  ;;  %938 = vmatpush.msrb.mxu1 %v3162_v45 }
 0x1c3   :  { %1083 = vmatpush.msra.mxu0 %v2810_v55  ;;  %956 = vmatpush.msrb.mxu2 %v3131_v15 }
 0x1c4   :  { %976 = vmatpush.msra.mxu3 %v3136_v47  ;;  %939 = vmatpush.msrb.mxu1 %v3180_v37 }
 0x1c5   :  { %1084 = vmatpush.msra.mxu0 %v2816_v17  ;;  %957 = vmatpush.msrb.mxu2 %v3149_v13 }
 0x1c6   :  { %977 = vmatpush.msra.mxu3 %v3154_v57 }
 0x1c7   :  { %1085 = vmatpush.msra.mxu0 %v2822_v62  ;;  %958 = vmatpush.msrb.mxu2 %v3167_v29 }
 0x1c8   :  { %978 = vmatpush.msra.mxu3 %v3172_v7 }
 0x1c9   :  { %1086 = vmatpush.msra.mxu0 %v2828_v19 }
 0x1cb   :  { %1087 = vmatpush.msra.mxu0 %v2834_v22 }
 0x1cd   :  { %1088 = vmatpush.msra.mxu0 %v2840_v11 }
 0x1cf   :  { %1089 = vmatpush.msra.mxu0 %v2846_v34 }
 0x1d1   :  { %1090 = vmatpush.msra.mxu0 %v2852_v42  ;;  %v3208_v42 = vld [vmem:[%s3707_s2 + $0x1f8] sm:$0xff] }
 0x1d3   :  { %1091 = vmatpush.msra.mxu0 %v2858_v41  ;;  %v3203_v41 = vld [vmem:[%s3707_s2 + $0x1f0] sm:$0xff] }
 0x1d5   :  { %1092 = vmatpush.msra.mxu0 %v2864_v48  ;;  %v3198_v48 = vld [vmem:[%s3707_s2 + $0x1e8] sm:$0xff] }
 0x1d6   :  { %1099 = vmatpush.msra.mxu1 %v3198_v48 }
 0x1d7   :  { %1093 = vmatpush.msra.mxu0 %v2870_v50  ;;  %v3190_v50 = vld [vmem:[%s3707_s2 + $0x18] sm:$0xff] }
 0x1d8   :  { %3767 = vst [vmem:[#allocation42_spill] sm:$0xff] %v3190_v50  ;;  %979 = vmatpush.msra.mxu3 %v3190_v50  ;;  %1100 = vmatpush.msra.mxu1 %v2928_v60 }
 0x1d9   :  { %1094 = vmatpush.msra.mxu0 %v2876_v52  ;;  %v3185_v52 = vld [vmem:[%s3707_s2 + $0x10] sm:$0xff] }
 0x1da   :  { %3766 = vst [vmem:[#allocation41_spill] sm:$0xff] %v3185_v52  ;;  %959 = vmatpush.msrb.mxu2 %v3185_v52  ;;  %1139 = vmatpush.msrb.mxu3 %v3208_v42 }
 0x1db   :  { %1101 = vmatpush.msra.mxu1 %v2946_v61 }
 0x1dc   :  { %1119 = vmatpush.msra.mxu2 %v3203_v41  ;;  %1140 = vmatpush.msrb.mxu3 %v2938_v0 }
 0x1dd   :  { %1102 = vmatpush.msra.mxu1 %v2964_v12 }
 0x1de   :  { %1120 = vmatpush.msra.mxu2 %v2933_v23  ;;  %1141 = vmatpush.msrb.mxu3 %v2956_v9 }
 0x1df   :  { %1103 = vmatpush.msra.mxu1 %v2982_v6 }
 0x1e0   :  { %1121 = vmatpush.msra.mxu2 %v2951_v3  ;;  %1142 = vmatpush.msrb.mxu3 %v2974_v53 }
 0x1e1   :  { %1104 = vmatpush.msra.mxu1 %v3000_v21 }
 0x1e2   :  { %1122 = vmatpush.msra.mxu2 %v2969_v2  ;;  %1143 = vmatpush.msrb.mxu3 %v2992_v8 }
 0x1e3   :  { %1105 = vmatpush.msra.mxu1 %v3018_v27 }
 0x1e4   :  { %1123 = vmatpush.msra.mxu2 %v2987_v16  ;;  %1144 = vmatpush.msrb.mxu3 %v3010_v58 }
 0x1e5   :  { %1106 = vmatpush.msra.mxu1 %v3036_v56 }
 0x1e6   :  { %1124 = vmatpush.msra.mxu2 %v3005_v24  ;;  %1145 = vmatpush.msrb.mxu3 %v3028_v20 }
 0x1e7   :  { %1107 = vmatpush.msra.mxu1 %v3054_v32 }
 0x1e8   :  { %1125 = vmatpush.msra.mxu2 %v3023_v5  ;;  %1146 = vmatpush.msrb.mxu3 %v3046_v49 }
 0x1e9   :  { %1108 = vmatpush.msra.mxu1 %v3072_v40 }
 0x1ea   :  { %1126 = vmatpush.msra.mxu2 %v3041_v43  ;;  %1147 = vmatpush.msrb.mxu3 %v3064_v10 }
 0x1eb   :  { %1109 = vmatpush.msra.mxu1 %v3090_v4 }
 0x1ec   :  { %1127 = vmatpush.msra.mxu2 %v3059_v39  ;;  %1148 = vmatpush.msrb.mxu3 %v3082_v28 }
 0x1ed   :  { %1110 = vmatpush.msra.mxu1 %v3108_v33 }
 0x1ee   :  { %1128 = vmatpush.msra.mxu2 %v3077_v59  ;;  %1149 = vmatpush.msrb.mxu3 %v3100_v25 }
 0x1ef   :  { %1111 = vmatpush.msra.mxu1 %v3126_v35 }
 0x1f0   :  { %1129 = vmatpush.msra.mxu2 %v3095_v51  ;;  %1150 = vmatpush.msrb.mxu3 %v3118_v38 }
 0x1f1   :  { %1112 = vmatpush.msra.mxu1 %v3144_v18 }
 0x1f2   :  { %1130 = vmatpush.msra.mxu2 %v3113_v63  ;;  %1151 = vmatpush.msrb.mxu3 %v3136_v47 }
 0x1f3   :  { %1113 = vmatpush.msra.mxu1 %v3162_v45 }
 0x1f4   :  { %1131 = vmatpush.msra.mxu2 %v3131_v15  ;;  %1152 = vmatpush.msrb.mxu3 %v3154_v57 }
 0x1f5   :  { %1114 = vmatpush.msra.mxu1 %v3180_v37 }
 0x1f6   :  { %1132 = vmatpush.msra.mxu2 %v3149_v13  ;;  %1153 = vmatpush.msrb.mxu3 %v3172_v7 }
 0x1f8   :  { %1133 = vmatpush.msra.mxu2 %v3167_v29  ;;  %1154 = vmatpush.msrb.mxu3 %v3190_v50 }
 0x1fa   :  { %1134 = vmatpush.msra.mxu2 %v3185_v52 }
 0x236   :  { %v746_v34 = vpop.f32.mrf.mxu0  ;;  %v766_v11 = vpop.f32.mrf.mxu1 }
 0x237   :  { %v809_v22 = vadd.f32 %v746_v34, %v2714_v31  ;;  %v810_v19 = vadd.f32 %v766_v11, %v2738_v26 }
 0x239   :  { %v813_v62 = vmul.f32 0.5, %v809_v22  ;;  %v817_v17 = vmul.f32 0.5, %v810_v19 }
 0x23b   :  { %1836 = vtanh.f32 %v813_v62 }
 0x23c   :  { %1838 = vtanh.f32 %v817_v17 }
 0x23d   :  { %v786_v31 = vpop.f32.mrf.mxu2  ;;  %v806_v26 = vpop.f32.mrf.mxu3 }
 0x23e   :  { %v811_v19 = vadd.f32 %v786_v31, %v2740_v1  ;;  %v812_v22 = vadd.f32 %v806_v26, %v2719_v14 }
 0x240   :  { %1840 = vtanh.f32 %v811_v19  ;;  %v822_v17 = vmul.f32 0.5, %v812_v22 }
 0x241   :  { %v1837_v62 = vpop.eup %1836 }
 0x242   :  { %v1839_v11 = vpop.eup %1838  ;;  %v815_v34 = vmul.f32 0.5, %v1837_v62  ;;  %1842 = vtanh.f32 %v822_v17 }
 0x243   :  { %v819_v14 = vmul.f32 0.5, %v1839_v11 }
 0x244   :  { %v816_v1 = vadd.f32 0.5, %v815_v34 }
 0x245   :  { %v820_v31 = vadd.f32 0.5, %v819_v14 }
 0x246   :  { %v1841_v26 = vpop.eup %1840 }
 0x247   :  { %v826_v19 = vmul.f32 %v820_v31, %v2895_v54  ;;  %v827_v22 = vmul.f32 %v1841_v26, %v816_v1  ;;  %v3774_v1 = vld [vmem:[#allocation32_spill] sm:$0xff]  ;;  %v3775_v31 = vld [vmem:[#allocation33_spill] sm:$0xff]  ;;  %v3776_v26 = vld [vmem:[#allocation34_spill] sm:$0xff] }
 0x248   :  { %v1843_v17 = vpop.eup %1842 }
 0x249   :  { %v3244_v62 = vadd.f32 %v827_v22, %v826_v19  ;;  %v824_v54 = vmul.f32 0.5, %v1843_v17  ;;  %v3777_v19 = vld [vmem:[#allocation35_spill] sm:$0xff]  ;;  %v3778_v22 = vld [vmem:[#allocation36_spill] sm:$0xff]  ;;  %v3779_v17 = vld [vmem:[#allocation37_spill] sm:$0xff] }
 0x24b   :  { %1844 = vtanh.f32 %v3244_v62  ;;  %v825_v11 = vadd.f32 0.5, %v824_v54 }
 0x251   :  { %v1845_v34 = vpop.eup %1844 }
 0x252   :  { %v3260_v14 = vmul.f32 %v1845_v34, %v825_v11  ;;  %v3780_v34 = vld [vmem:[#allocation9_spill] sm:$0xff] }
 0x254   :  { %3768 = vst [vmem:[#allocation43_spill] sm:$0xff] %v3260_v14  ;;  %920 = vmatmul.f32.vlgmr.msrb.gmra.mxu0 %v3260_v14  ;;  %940 = vmatmul.f32.vlgmr.msrb.gmra.mxu1 %v3260_v14 }
 0x255   :  { %960 = vmatmul.f32.vlgmr.msrb.gmra.mxu2 %v3260_v14  ;;  %980 = vmatmul.f32.vlgmr.msra.gmra.mxu3 %v3260_v14 }
 0x256   :  { %1254 = vmatpush.msrb.mxu0 %v2770_v36  ;;  %1274 = vmatpush.msrb.mxu1 %v3198_v48  ;;  %v3769_v36 = vld [vmem:[#allocation27_spill] sm:$0xff] }
 0x257   :  { %1294 = vmatpush.msrb.mxu2 %v3203_v41  ;;  %1314 = vmatpush.msra.mxu3 %v3208_v42 }
 0x258   :  { %1255 = vmatpush.msrb.mxu0 %v2792_v30  ;;  %1275 = vmatpush.msrb.mxu1 %v2928_v60  ;;  %v3770_v30 = vld [vmem:[#allocation28_spill] sm:$0xff] }
 0x259   :  { %1295 = vmatpush.msrb.mxu2 %v2933_v23  ;;  %1315 = vmatpush.msra.mxu3 %v2938_v0 }
 0x25a   :  { %1256 = vmatpush.msrb.mxu0 %v2798_v44  ;;  %1276 = vmatpush.msrb.mxu1 %v2946_v61  ;;  %v3771_v44 = vld [vmem:[#allocation29_spill] sm:$0xff] }
 0x25b   :  { %1296 = vmatpush.msrb.mxu2 %v2951_v3  ;;  %1316 = vmatpush.msra.mxu3 %v2956_v9 }
 0x25c   :  { %1257 = vmatpush.msrb.mxu0 %v2804_v46  ;;  %1277 = vmatpush.msrb.mxu1 %v2964_v12  ;;  %v3772_v46 = vld [vmem:[#allocation30_spill] sm:$0xff] }
 0x25d   :  { %1297 = vmatpush.msrb.mxu2 %v2969_v2  ;;  %1317 = vmatpush.msra.mxu3 %v2974_v53 }
 0x25e   :  { %1258 = vmatpush.msrb.mxu0 %v2810_v55  ;;  %1278 = vmatpush.msrb.mxu1 %v2982_v6  ;;  %v3773_v55 = vld [vmem:[#allocation31_spill] sm:$0xff] }
 0x25f   :  { %1298 = vmatpush.msrb.mxu2 %v2987_v16  ;;  %1318 = vmatpush.msra.mxu3 %v2992_v8 }
 0x260   :  { %1259 = vmatpush.msrb.mxu0 %v3769_v36  ;;  %1279 = vmatpush.msrb.mxu1 %v3000_v21 }
 0x261   :  { %1299 = vmatpush.msrb.mxu2 %v3005_v24  ;;  %1319 = vmatpush.msra.mxu3 %v3010_v58 }
 0x262   :  { %1260 = vmatpush.msrb.mxu0 %v3770_v30  ;;  %1280 = vmatpush.msrb.mxu1 %v3018_v27  ;;  %v3781_v30 = vld [vmem:[#allocation15_spill] sm:$0xff] }
 0x263   :  { %1300 = vmatpush.msrb.mxu2 %v3023_v5  ;;  %1320 = vmatpush.msra.mxu3 %v3028_v20 }
 0x264   :  { %1261 = vmatpush.msrb.mxu0 %v3771_v44  ;;  %1281 = vmatpush.msrb.mxu1 %v3036_v56 }
 0x265   :  { %1301 = vmatpush.msrb.mxu2 %v3041_v43  ;;  %1321 = vmatpush.msra.mxu3 %v3046_v49 }
 0x266   :  { %1262 = vmatpush.msrb.mxu0 %v3772_v46  ;;  %1282 = vmatpush.msrb.mxu1 %v3054_v32 }
 0x267   :  { %1302 = vmatpush.msrb.mxu2 %v3059_v39  ;;  %1322 = vmatpush.msra.mxu3 %v3064_v10 }
 0x268   :  { %1263 = vmatpush.msrb.mxu0 %v3773_v55  ;;  %1283 = vmatpush.msrb.mxu1 %v3072_v40 }
 0x269   :  { %1303 = vmatpush.msrb.mxu2 %v3077_v59  ;;  %1323 = vmatpush.msra.mxu3 %v3082_v28 }
 0x26a   :  { %1264 = vmatpush.msrb.mxu0 %v3774_v1  ;;  %1284 = vmatpush.msrb.mxu1 %v3090_v4 }
 0x26b   :  { %1304 = vmatpush.msrb.mxu2 %v3095_v51  ;;  %1324 = vmatpush.msra.mxu3 %v3100_v25 }
 0x26c   :  { %1265 = vmatpush.msrb.mxu0 %v3775_v31  ;;  %1285 = vmatpush.msrb.mxu1 %v3108_v33 }
 0x26d   :  { %1305 = vmatpush.msrb.mxu2 %v3113_v63  ;;  %1325 = vmatpush.msra.mxu3 %v3118_v38 }
 0x26e   :  { %1266 = vmatpush.msrb.mxu0 %v3776_v26  ;;  %1286 = vmatpush.msrb.mxu1 %v3126_v35  ;;  %v3782_v26 = vld [vmem:[#allocation16_spill] sm:$0xff] }
 0x26f   :  { %1306 = vmatpush.msrb.mxu2 %v3131_v15  ;;  %1326 = vmatpush.msra.mxu3 %v3136_v47 }
 0x270   :  { %1267 = vmatpush.msrb.mxu0 %v3777_v19  ;;  %1287 = vmatpush.msrb.mxu1 %v3144_v18 }
 0x271   :  { %1307 = vmatpush.msrb.mxu2 %v3149_v13  ;;  %1327 = vmatpush.msra.mxu3 %v3154_v57 }
 0x272   :  { %1268 = vmatpush.msrb.mxu0 %v3778_v22  ;;  %1288 = vmatpush.msrb.mxu1 %v3162_v45  ;;  %v3783_v22 = vld [vmem:[#allocation11_spill] sm:$0xff] }
 0x273   :  { %1308 = vmatpush.msrb.mxu2 %v3167_v29  ;;  %1328 = vmatpush.msra.mxu3 %v3172_v7 }
 0x274   :  { %1269 = vmatpush.msrb.mxu0 %v3779_v17  ;;  %1289 = vmatpush.msrb.mxu1 %v3180_v37 }
 0x275   :  { %1309 = vmatpush.msrb.mxu2 %v3185_v52  ;;  %1329 = vmatpush.msra.mxu3 %v3190_v50 }
 0x2d1   :  { %v921_v54 = vpop.f32.mrf.mxu0  ;;  %v941_v11 = vpop.f32.mrf.mxu1 }
 0x2d2   :  { %v984_v36 = vadd.f32 %v921_v54, %v3780_v34  ;;  %v985_v44 = vadd.f32 %v941_v11, %v3781_v30 }
 0x2d4   :  { %v988_v46 = vmul.f32 0.5, %v984_v36  ;;  %v992_v55 = vmul.f32 0.5, %v985_v44 }
 0x2d6   :  { %1846 = vtanh.f32 %v988_v46 }
 0x2d7   :  { %1848 = vtanh.f32 %v992_v55 }
 0x2d8   :  { %v961_v1 = vpop.f32.mrf.mxu2  ;;  %v981_v31 = vpop.f32.mrf.mxu3 }
 0x2d9   :  { %v986_v19 = vadd.f32 %v961_v1, %v3782_v26  ;;  %v987_v17 = vadd.f32 %v981_v31, %v3783_v22 }
 0x2db   :  { %1850 = vtanh.f32 %v986_v19  ;;  %v997_v14 = vmul.f32 0.5, %v987_v17  ;;  %v3792_v17 = vld [vmem:[#allocation7_spill] sm:$0xff] }
 0x2dc   :  { %v1847_v52 = vpop.eup %1846 }
 0x2dd   :  { %v1849_v50 = vpop.eup %1848  ;;  %v990_v37 = vmul.f32 0.5, %v1847_v52  ;;  %1852 = vtanh.f32 %v997_v14  ;;  %v1365_v14 = vld [vmem:[%s3707_s2] sm:$0xff] }
 0x2de   :  { %v994_v7 = vmul.f32 0.5, %v1849_v50 }
 0x2df   :  { %v991_v54 = vadd.f32 0.5, %v990_v37  ;;  %v3785_v37 = vld [vmem:[#allocation40_spill] sm:$0xff] }
 0x2e0   :  { %v995_v34 = vadd.f32 0.5, %v994_v7  ;;  %v3789_v7 = vld [vmem:[#allocation18_spill] sm:$0xff] }
 0x2e1   :  { %v1851_v11 = vpop.eup %1850 }
 0x2e2   :  { %v1001_v36 = vmul.f32 %v995_v34, %v3244_v62  ;;  %v1002_v30 = vmul.f32 %v1851_v11, %v991_v54  ;;  %v1369_v62 = vld [vmem:[%s3707_s2 + $0x20] sm:$0xff]  ;;  %v3793_v34 = vld [vmem:[#allocation20_spill] sm:$0xff] }
 0x2e3   :  { %v1853_v44 = vpop.eup %1852 }
 0x2e4   :  { %v3341_v46 = vadd.f32 %v1002_v30, %v1001_v36  ;;  %v999_v55 = vmul.f32 0.5, %v1853_v44 }
 0x2e6   :  { %1854 = vtanh.f32 %v3341_v46  ;;  %v1000_v1 = vadd.f32 0.5, %v999_v55  ;;  %v3794_v55 = vld [vmem:[#allocation21_spill] sm:$0xff] }
 0x2ec   :  { %v1855_v31 = vpop.eup %1854 }
 0x2ed   :  { %v3344_v26 = vmul.f32 %v1855_v31, %v1000_v1  ;;  %v3795_v31 = vld [vmem:[#allocation13_spill] sm:$0xff] }
 0x2ef   :  { %1095 = vmatmul.f32.vlgmr.msra.gmra.mxu0 %v3344_v26  ;;  %1115 = vmatmul.f32.vlgmr.msra.gmra.mxu1 %v3344_v26 }
 0x2f0   :  { %1135 = vmatmul.f32.vlgmr.msra.gmra.mxu2 %v3344_v26  ;;  %1155 = vmatmul.f32.vlgmr.msrb.gmra.mxu3 %v3344_v26 }
 0x2f1   :  { %1449 = vmatpush.msra.mxu1 %v3198_v48  ;;  %1469 = vmatpush.msra.mxu2 %v3203_v41 }
 0x2f2   :  { %1489 = vmatpush.msrb.mxu3 %v3208_v42 }
 0x2f3   :  { %1450 = vmatpush.msra.mxu1 %v2928_v60  ;;  %1470 = vmatpush.msra.mxu2 %v2933_v23 }
 0x2f4   :  { %1490 = vmatpush.msrb.mxu3 %v2938_v0 }
 0x2f5   :  { %1451 = vmatpush.msra.mxu1 %v2946_v61  ;;  %1471 = vmatpush.msra.mxu2 %v2951_v3 }
 0x2f6   :  { %1491 = vmatpush.msrb.mxu3 %v2956_v9 }
 0x2f7   :  { %1452 = vmatpush.msra.mxu1 %v2964_v12  ;;  %1472 = vmatpush.msra.mxu2 %v2969_v2 }
 0x2f8   :  { %1492 = vmatpush.msrb.mxu3 %v2974_v53 }
 0x2f9   :  { %1453 = vmatpush.msra.mxu1 %v2982_v6  ;;  %1473 = vmatpush.msra.mxu2 %v2987_v16 }
 0x2fa   :  { %1493 = vmatpush.msrb.mxu3 %v2992_v8  ;;  %v1421_v8 = vld [vmem:[%s3707_s2 + $0x1c0] sm:$0xff] }
 0x2fb   :  { %1454 = vmatpush.msra.mxu1 %v3000_v21  ;;  %1474 = vmatpush.msra.mxu2 %v3005_v24  ;;  %v1417_v21 = vld [vmem:[%s3707_s2 + $0x1a0] sm:$0xff] }
 0x2fc   :  { %1494 = vmatpush.msrb.mxu3 %v3010_v58  ;;  %v1413_v24 = vld [vmem:[%s3707_s2 + $0x180] sm:$0xff] }
 0x2fd   :  { %1455 = vmatpush.msra.mxu1 %v3018_v27  ;;  %1475 = vmatpush.msra.mxu2 %v3023_v5  ;;  %v1397_v58 = vld [vmem:[%s3707_s2 + $0x100] sm:$0xff] }
 0x2fe   :  { %1495 = vmatpush.msrb.mxu3 %v3028_v20  ;;  %v1393_v27 = vld [vmem:[%s3707_s2 + $0xe0] sm:$0xff] }
 0x2ff   :  { %1456 = vmatpush.msra.mxu1 %v3036_v56  ;;  %1476 = vmatpush.msra.mxu2 %v3041_v43  ;;  %v1389_v5 = vld [vmem:[%s3707_s2 + $0xc0] sm:$0xff] }
 0x300   :  { %1496 = vmatpush.msrb.mxu3 %v3046_v49  ;;  %v1385_v20 = vld [vmem:[%s3707_s2 + $0xa0] sm:$0xff] }
 0x301   :  { %1457 = vmatpush.msra.mxu1 %v3054_v32  ;;  %1477 = vmatpush.msra.mxu2 %v3059_v39  ;;  %v1381_v56 = vld [vmem:[%s3707_s2 + $0x80] sm:$0xff] }
 0x302   :  { %1497 = vmatpush.msrb.mxu3 %v3064_v10  ;;  %v1377_v43 = vld [vmem:[%s3707_s2 + $0x60] sm:$0xff] }
 0x303   :  { %1458 = vmatpush.msra.mxu1 %v3072_v40  ;;  %1478 = vmatpush.msra.mxu2 %v3077_v59  ;;  %v3786_v40 = vld [vmem:[#allocation41_spill] sm:$0xff]  ;;  %v1373_v49 = vld [vmem:[%s3707_s2 + $0x40] sm:$0xff] }
 0x304   :  { %1498 = vmatpush.msrb.mxu3 %v3082_v28 }
 0x305   :  { %1459 = vmatpush.msra.mxu1 %v3090_v4  ;;  %1479 = vmatpush.msra.mxu2 %v3095_v51  ;;  %v3791_v51 = vld [vmem:[#allocation12_spill] sm:$0xff] }
 0x306   :  { %1499 = vmatpush.msrb.mxu3 %v3100_v25 }
 0x307   :  { %1460 = vmatpush.msra.mxu1 %v3108_v33  ;;  %1480 = vmatpush.msra.mxu2 %v3113_v63  ;;  %v3784_v33 = vld [vmem:[#allocation39_spill] sm:$0xff]  ;;  %v3787_v63 = vld [vmem:[#allocation42_spill] sm:$0xff] }
 0x308   :  { %1500 = vmatpush.msrb.mxu3 %v3118_v38  ;;  %v3790_v38 = vld [vmem:[#allocation19_spill] sm:$0xff] }
 0x309   :  { %1461 = vmatpush.msra.mxu1 %v3126_v35  ;;  %1481 = vmatpush.msra.mxu2 %v3131_v15  ;;  %v3401_v15 = vld [vmem:[%s3707_s2 + $0x1e0] sm:$0xff] }
 0x30a   :  { %1501 = vmatpush.msrb.mxu3 %v3136_v47  ;;  %1429 = vmatpush.msra.mxu0 %v3401_v15 }
 0x30b   :  { %1462 = vmatpush.msra.mxu1 %v3144_v18  ;;  %1482 = vmatpush.msra.mxu2 %v3149_v13 }
 0x30c   :  { %1502 = vmatpush.msrb.mxu3 %v3154_v57  ;;  %v3788_v57 = vld [vmem:[#allocation6_spill] sm:$0xff]  ;;  %1430 = vmatpush.msra.mxu0 %v1421_v8 }
 0x30d   :  { %1463 = vmatpush.msra.mxu1 %v3162_v45  ;;  %1483 = vmatpush.msra.mxu2 %v3167_v29 }
 0x30e   :  { %1503 = vmatpush.msrb.mxu3 %v3784_v33  ;;  %1431 = vmatpush.msra.mxu0 %v1417_v21 }
 0x30f   :  { %1464 = vmatpush.msra.mxu1 %v3785_v37  ;;  %1484 = vmatpush.msra.mxu2 %v3786_v40 }
 0x310   :  { %1504 = vmatpush.msrb.mxu3 %v3787_v63  ;;  %1432 = vmatpush.msra.mxu0 %v1413_v24 }
 0x36c   :  { %v1096_v47 = vpop.f32.mrf.mxu0  ;;  %v1116_v4 = vpop.f32.mrf.mxu1 }
 0x36d   :  { %v1159_v45 = vadd.f32 %v1096_v47, %v3788_v57  ;;  %v1160_v29 = vadd.f32 %v1116_v4, %v3789_v7 }
 0x36f   :  { %v1163_v32 = vmul.f32 0.5, %v1159_v45  ;;  %v1167_v13 = vmul.f32 0.5, %v1160_v29 }
 0x371   :  { %1856 = vtanh.f32 %v1163_v32 }
 0x372   :  { %1858 = vtanh.f32 %v1167_v13 }
 0x373   :  { %v1136_v18 = vpop.f32.mrf.mxu2  ;;  %v1156_v35 = vpop.f32.mrf.mxu3 }
 0x374   :  { %v1161_v25 = vadd.f32 %v1136_v18, %v3790_v38  ;;  %v1162_v10 = vadd.f32 %v1156_v35, %v3791_v51  ;;  %v1597_v51 = vld [vmem:[%s3707_s2 + $0x1c8] sm:$0xff] }
 0x376   :  { %1860 = vtanh.f32 %v1161_v25  ;;  %v1172_v39 = vmul.f32 0.5, %v1162_v10  ;;  %v1598_v10 = vld [vmem:[%s3707_s2 + $0x1d0] sm:$0xff] }
 0x377   :  { %v1857_v28 = vpop.eup %1856 }
 0x378   :  { %v1859_v50 = vpop.eup %1858  ;;  %v1165_v52 = vmul.f32 0.5, %v1857_v28  ;;  %1862 = vtanh.f32 %v1172_v39  ;;  %v1599_v39 = vld [vmem:[%s3707_s2 + $0x1d8] sm:$0xff]  ;;  %v1593_v28 = vld [vmem:[%s3707_s2 + $0x1a8] sm:$0xff] }
 0x379   :  { %v1169_v59 = vmul.f32 0.5, %v1859_v50  ;;  %v1594_v50 = vld [vmem:[%s3707_s2 + $0x1b0] sm:$0xff] }
 0x37a   :  { %v1166_v60 = vadd.f32 0.5, %v1165_v52  ;;  %v1595_v52 = vld [vmem:[%s3707_s2 + $0x1b8] sm:$0xff] }
 0x37b   :  { %v1170_v23 = vadd.f32 0.5, %v1169_v59  ;;  %v1589_v59 = vld [vmem:[%s3707_s2 + $0x188] sm:$0xff] }
 0x37c   :  { %v1861_v0 = vpop.eup %1860 }
 0x37d   :  { %v1176_v61 = vmul.f32 %v1170_v23, %v3341_v46  ;;  %v1177_v3 = vmul.f32 %v1861_v0, %v1166_v60  ;;  %v1590_v60 = vld [vmem:[%s3707_s2 + $0x190] sm:$0xff]  ;;  %v1591_v23 = vld [vmem:[%s3707_s2 + $0x198] sm:$0xff]  ;;  %v1585_v0 = vld [vmem:[%s3707_s2 + $0x168] sm:$0xff] }
 0x37e   :  { %v1863_v9 = vpop.eup %1862 }
 0x37f   :  { %v3409_v12 = vadd.f32 %v1177_v3, %v1176_v61  ;;  %v1174_v2 = vmul.f32 0.5, %v1863_v9  ;;  %v1586_v61 = vld [vmem:[%s3707_s2 + $0x170] sm:$0xff]  ;;  %v1587_v3 = vld [vmem:[%s3707_s2 + $0x178] sm:$0xff] }
 0x380   :  { %v1733_v9 = vld [vmem:[%s3710_s4 + $0x78] sm:$0xff] }
 0x381   :  { %1864 = vtanh.f32 %v3409_v12  ;;  %v1175_v53 = vadd.f32 0.5, %v1174_v2  ;;  %v1582_v2 = vld [vmem:[%s3707_s2 + $0x150] sm:$0xff] }
 0x387   :  { %v1865_v6 = vpop.eup %1864 }
 0x388   :  { %v3412_v16 = vmul.f32 %v1865_v6, %v1175_v53  ;;  %v1583_v53 = vld [vmem:[%s3707_s2 + $0x158] sm:$0xff]  ;;  %v1732_v6 = vld [vmem:[%s3710_s4 + $0x70] sm:$0xff] }
 0x38a   :  { %1270 = vmatmul.f32.vlgmr.msrb.gmra.mxu0 %v3412_v16  ;;  %1290 = vmatmul.f32.vlgmr.msrb.gmra.mxu1 %v3412_v16 }
 0x38b   :  { %1310 = vmatmul.f32.vlgmr.msrb.gmra.mxu2 %v3412_v16  ;;  %1330 = vmatmul.f32.vlgmr.msra.gmra.mxu3 %v3412_v16 }
 0x38c   :  { %1624 = vmatpush.msrb.mxu1 %v3198_v48  ;;  %1644 = vmatpush.msrb.mxu2 %v3203_v41  ;;  %v1409_v41 = vld [vmem:[%s3707_s2 + $0x160] sm:$0xff] }
 0x38d   :  { %1664 = vmatpush.msra.mxu3 %v3208_v42  ;;  %1433 = vmatpush.msra.mxu0 %v1409_v41  ;;  %v1405_v42 = vld [vmem:[%s3707_s2 + $0x140] sm:$0xff] }
 0x38e   :  { %v1401_v48 = vld [vmem:[%s3707_s2 + $0x120] sm:$0xff]  ;;  %1625 = vmatpush.msrb.mxu1 %v1597_v51  ;;  %1645 = vmatpush.msrb.mxu2 %v1598_v10  ;;  %v3796_v10 = vld [vmem:[#allocation8_spill] sm:$0xff] }
 0x38f   :  { %1434 = vmatpush.msra.mxu0 %v1405_v42  ;;  %1665 = vmatpush.msra.mxu3 %v1599_v39 }
 0x390   :  { %1626 = vmatpush.msrb.mxu1 %v1593_v28  ;;  %1646 = vmatpush.msrb.mxu2 %v1594_v50  ;;  %v3797_v28 = vld [vmem:[#allocation22_spill] sm:$0xff] }
 0x391   :  { %1435 = vmatpush.msra.mxu0 %v1401_v48  ;;  %1666 = vmatpush.msra.mxu3 %v1595_v52  ;;  %v1719_v52 = vld [vmem:[%s3710_s4 + $0x8] sm:$0xff] }
 0x392   :  { %1627 = vmatpush.msrb.mxu1 %v1589_v59  ;;  %1647 = vmatpush.msrb.mxu2 %v1590_v60 }
 0x393   :  { %1436 = vmatpush.msra.mxu0 %v1397_v58  ;;  %1667 = vmatpush.msra.mxu3 %v1591_v23  ;;  %v1718_v23 = vld [vmem:[%s3710_s4] sm:$0xff] }
 0x394   :  { %1628 = vmatpush.msrb.mxu1 %v1585_v0  ;;  %1648 = vmatpush.msrb.mxu2 %v1586_v61 }
 0x395   :  { %1437 = vmatpush.msra.mxu0 %v1393_v27  ;;  %1668 = vmatpush.msra.mxu3 %v1587_v3  ;;  %v3798_v3 = vld [vmem:[#allocation23_spill] sm:$0xff] }
 0x396   :  { %1649 = vmatpush.msrb.mxu2 %v1582_v2 }
 0x397   :  { %1438 = vmatpush.msra.mxu0 %v1389_v5  ;;  %1669 = vmatpush.msra.mxu3 %v1583_v53 }
 0x399   :  { %1439 = vmatpush.msra.mxu0 %v1385_v20 }
 0x39b   :  { %1440 = vmatpush.msra.mxu0 %v1381_v56 }
 0x39d   :  { %1441 = vmatpush.msra.mxu0 %v1377_v43 }
 0x39f   :  { %1442 = vmatpush.msra.mxu0 %v1373_v49 }
 0x3a1   :  { %1443 = vmatpush.msra.mxu0 %v1369_v62 }
 0x3a3   :  { %1444 = vmatpush.msra.mxu0 %v1365_v14 }
 0x3a5   :  { %1604 = vmatpush.msrb.mxu0 %v3401_v15 }
 0x3a7   :  { %1605 = vmatpush.msrb.mxu0 %v1421_v8  ;;  %v1577_v8 = vld [vmem:[%s3707_s2 + $0x128] sm:$0xff] }
 0x3a9   :  { %1606 = vmatpush.msrb.mxu0 %v1417_v21  ;;  %v1578_v21 = vld [vmem:[%s3707_s2 + $0x130] sm:$0xff] }
 0x3aa   :  { %1650 = vmatpush.msrb.mxu2 %v1578_v21 }
 0x3ab   :  { %1607 = vmatpush.msrb.mxu0 %v1413_v24  ;;  %v1579_v24 = vld [vmem:[%s3707_s2 + $0x138] sm:$0xff] }
 0x3ac   :  { %1670 = vmatpush.msra.mxu3 %v1579_v24 }
 0x3ad   :  { %1608 = vmatpush.msrb.mxu0 %v1409_v41  ;;  %v1731_v41 = vld [vmem:[%s3710_s4 + $0x68] sm:$0xff] }
 0x3af   :  { %1609 = vmatpush.msrb.mxu0 %v1405_v42  ;;  %v1573_v42 = vld [vmem:[%s3707_s2 + $0x108] sm:$0xff] }
 0x3b1   :  { %1610 = vmatpush.msrb.mxu0 %v1401_v48  ;;  %v1574_v48 = vld [vmem:[%s3707_s2 + $0x110] sm:$0xff] }
 0x3b2   :  { %1651 = vmatpush.msrb.mxu2 %v1574_v48 }
 0x3b3   :  { %1611 = vmatpush.msrb.mxu0 %v1397_v58  ;;  %v1575_v58 = vld [vmem:[%s3707_s2 + $0x118] sm:$0xff] }
 0x3b4   :  { %1671 = vmatpush.msra.mxu3 %v1575_v58 }
 0x3b5   :  { %1612 = vmatpush.msrb.mxu0 %v1393_v27  ;;  %v1730_v27 = vld [vmem:[%s3710_s4 + $0x60] sm:$0xff] }
 0x3b7   :  { %1613 = vmatpush.msrb.mxu0 %v1389_v5  ;;  %v1569_v5 = vld [vmem:[%s3707_s2 + $0xe8] sm:$0xff] }
 0x3b9   :  { %1614 = vmatpush.msrb.mxu0 %v1385_v20  ;;  %v1570_v20 = vld [vmem:[%s3707_s2 + $0xf0] sm:$0xff] }
 0x3ba   :  { %1652 = vmatpush.msrb.mxu2 %v1570_v20 }
 0x3bb   :  { %1615 = vmatpush.msrb.mxu0 %v1381_v56  ;;  %v1571_v56 = vld [vmem:[%s3707_s2 + $0xf8] sm:$0xff] }
 0x3bc   :  { %1672 = vmatpush.msra.mxu3 %v1571_v56 }
 0x3bd   :  { %1616 = vmatpush.msrb.mxu0 %v1377_v43  ;;  %v1729_v43 = vld [vmem:[%s3710_s4 + $0x58] sm:$0xff] }
 0x3bf   :  { %1617 = vmatpush.msrb.mxu0 %v1373_v49  ;;  %v1565_v49 = vld [vmem:[%s3707_s2 + $0xc8] sm:$0xff] }
 0x3c1   :  { %1618 = vmatpush.msrb.mxu0 %v1369_v62  ;;  %v1566_v62 = vld [vmem:[%s3707_s2 + $0xd0] sm:$0xff] }
 0x3c2   :  { %1653 = vmatpush.msrb.mxu2 %v1566_v62 }
 0x3c3   :  { %1619 = vmatpush.msrb.mxu0 %v1365_v14  ;;  %v1567_v14 = vld [vmem:[%s3707_s2 + $0xd8] sm:$0xff] }
 0x3c4   :  { %1673 = vmatpush.msra.mxu3 %v1567_v14  ;;  %v3800_v14 = vld [vmem:[#allocation26_spill] sm:$0xff] }
 0x407   :  { %v1271_v19 = vpop.f32.mrf.mxu0  ;;  %v1291_v22 = vpop.f32.mrf.mxu1 }
 0x408   :  { %v1334_v54 = vadd.f32 %v1271_v19, %v3792_v17  ;;  %v1335_v11 = vadd.f32 %v1291_v22, %v3793_v34  ;;  %v1728_v19 = vld [vmem:[%s3710_s4 + $0x50] sm:$0xff]  ;;  %v1561_v22 = vld [vmem:[%s3707_s2 + $0xa8] sm:$0xff] }
 0x409   :  { %v1562_v17 = vld [vmem:[%s3707_s2 + $0xb0] sm:$0xff]  ;;  %v1727_v34 = vld [vmem:[%s3710_s4 + $0x48] sm:$0xff] }
 0x40a   :  { %v1338_v36 = vmul.f32 0.5, %v1334_v54  ;;  %v1342_v30 = vmul.f32 0.5, %v1335_v11  ;;  %v1563_v54 = vld [vmem:[%s3707_s2 + $0xb8] sm:$0xff]  ;;  %1654 = vmatpush.msrb.mxu2 %v1562_v17  ;;  %v1557_v11 = vld [vmem:[%s3707_s2 + $0x88] sm:$0xff] }
 0x40b   :  { %1674 = vmatpush.msra.mxu3 %v1563_v54  ;;  %v3803_v54 = vld [vmem:[#allocation10_spill] sm:$0xff] }
 0x40c   :  { %1866 = vtanh.f32 %v1338_v36  ;;  %v1558_v36 = vld [vmem:[%s3707_s2 + $0x90] sm:$0xff] }
 0x40d   :  { %1868 = vtanh.f32 %v1342_v30  ;;  %v1559_v30 = vld [vmem:[%s3707_s2 + $0x98] sm:$0xff]  ;;  %1655 = vmatpush.msrb.mxu2 %v1558_v36 }
 0x40e   :  { %v1311_v44 = vpop.f32.mrf.mxu2  ;;  %v1331_v46 = vpop.f32.mrf.mxu3  ;;  %1675 = vmatpush.msra.mxu3 %v1559_v30 }
 0x40f   :  { %v1336_v1 = vadd.f32 %v1311_v44, %v3794_v55  ;;  %v1337_v33 = vadd.f32 %v1331_v46, %v3795_v31  ;;  %v1726_v44 = vld [vmem:[%s3710_s4 + $0x40] sm:$0xff]  ;;  %v1553_v46 = vld [vmem:[%s3707_s2 + $0x68] sm:$0xff]  ;;  %v1554_v55 = vld [vmem:[%s3707_s2 + $0x70] sm:$0xff] }
 0x410   :  { %1656 = vmatpush.msrb.mxu2 %v1554_v55  ;;  %v1725_v31 = vld [vmem:[%s3710_s4 + $0x38] sm:$0xff] }
 0x411   :  { %1870 = vtanh.f32 %v1336_v1  ;;  %v1347_v37 = vmul.f32 0.5, %v1337_v33  ;;  %v1555_v1 = vld [vmem:[%s3707_s2 + $0x78] sm:$0xff]  ;;  %v1549_v33 = vld [vmem:[%s3707_s2 + $0x48] sm:$0xff] }
 0x412   :  { %v1867_v40 = vpop.eup %1866  ;;  %1676 = vmatpush.msra.mxu3 %v1555_v1 }
 0x413   :  { %v1869_v63 = vpop.eup %1868  ;;  %v1340_v15 = vmul.f32 0.5, %v1867_v40  ;;  %1872 = vtanh.f32 %v1347_v37  ;;  %v1550_v37 = vld [vmem:[%s3707_s2 + $0x50] sm:$0xff]  ;;  %v1551_v40 = vld [vmem:[%s3707_s2 + $0x58] sm:$0xff] }
 0x414   :  { %v1344_v47 = vmul.f32 0.5, %v1869_v63  ;;  %1657 = vmatpush.msrb.mxu2 %v1550_v37  ;;  %v1724_v63 = vld [vmem:[%s3710_s4 + $0x30] sm:$0xff]  ;;  %1677 = vmatpush.msra.mxu3 %v1551_v40 }
 0x415   :  { %v1341_v4 = vadd.f32 0.5, %v1340_v15  ;;  %v1545_v15 = vld [vmem:[%s3707_s2 + $0x28] sm:$0xff] }
 0x416   :  { %v1345_v57 = vadd.f32 0.5, %v1344_v47  ;;  %v1546_v47 = vld [vmem:[%s3707_s2 + $0x30] sm:$0xff] }
 0x417   :  { %v1871_v45 = vpop.eup %1870  ;;  %1658 = vmatpush.msrb.mxu2 %v1546_v47 }
 0x418   :  { %v1351_v7 = vmul.f32 %v1345_v57, %v3409_v12  ;;  %v1352_v29 = vmul.f32 %v1871_v45, %v1341_v4  ;;  %v1581_v12 = vld [vmem:[%s3707_s2 + $0x148] sm:$0xff]  ;;  %v1547_v4 = vld [vmem:[%s3707_s2 + $0x38] sm:$0xff] }
 0x419   :  { %v1873_v32 = vpop.eup %1872  ;;  %1629 = vmatpush.msrb.mxu1 %v1581_v12  ;;  %v1723_v57 = vld [vmem:[%s3710_s4 + $0x28] sm:$0xff]  ;;  %1678 = vmatpush.msra.mxu3 %v1547_v4  ;;  %v3799_v12 = vld [vmem:[#allocation14_spill] sm:$0xff] }
 0x41a   :  { %v3472_v13 = vadd.f32 %v1352_v29, %v1351_v7  ;;  %v1349_v18 = vmul.f32 0.5, %v1873_v32  ;;  %v1541_v45 = vld [vmem:[%s3707_s2 + $0x8] sm:$0xff]  ;;  %v1542_v7 = vld [vmem:[%s3707_s2 + $0x10] sm:$0xff]  ;;  %v1543_v29 = vld [vmem:[%s3707_s2 + $0x18] sm:$0xff] }
 0x41b   :  { %1630 = vmatpush.msrb.mxu1 %v1577_v8  ;;  %1659 = vmatpush.msrb.mxu2 %v1542_v7  ;;  %v1722_v32 = vld [vmem:[%s3710_s4 + $0x20] sm:$0xff] }
 0x41c   :  { %1874 = vtanh.f32 %v3472_v13  ;;  %v1350_v35 = vadd.f32 0.5, %v1349_v18  ;;  %1679 = vmatpush.msra.mxu3 %v1543_v29  ;;  %v1721_v18 = vld [vmem:[%s3710_s4 + $0x18] sm:$0xff] }
 0x41d   :  { %1631 = vmatpush.msrb.mxu1 %v1573_v42 }
 0x41f   :  { %1632 = vmatpush.msrb.mxu1 %v1569_v5 }
 0x421   :  { %1633 = vmatpush.msrb.mxu1 %v1565_v49 }
 0x422   :  { %v1875_v38 = vpop.eup %1874 }
 0x423   :  { %v3475_v25 = vmul.f32 %v1875_v38, %v1350_v35  ;;  %1634 = vmatpush.msrb.mxu1 %v1561_v22  ;;  %v1720_v35 = vld [vmem:[%s3710_s4 + $0x10] sm:$0xff]  ;;  %v3802_v22 = vld [vmem:[#allocation43_spill] sm:$0xff] }
 0x425   :  { %1445 = vmatmul.f32.vlgmr.msra.gmra.mxu0 %v3475_v25  ;;  %1465 = vmatmul.f32.vlgmr.msra.gmra.mxu1 %v3475_v25 }
 0x426   :  { %1485 = vmatmul.f32.vlgmr.msra.gmra.mxu2 %v3475_v25  ;;  %1505 = vmatmul.f32.vlgmr.msrb.gmra.mxu3 %v3475_v25 }
 0x427   :  { %1738 = vmatpush.msra.mxu0 %v1733_v9  ;;  %1635 = vmatpush.msrb.mxu1 %v1557_v11  ;;  %v3804_v11 = vld [vmem:[#allocation24_spill] sm:$0xff] }
 0x429   :  { %1739 = vmatpush.msra.mxu0 %v1732_v6  ;;  %1636 = vmatpush.msrb.mxu1 %v1553_v46  ;;  %v1815_v46 = vld [vmem:[%s3711_s5] ss:$0 sm:$0xff] }
 0x42b   :  { %1740 = vmatpush.msra.mxu0 %v1731_v41  ;;  %1637 = vmatpush.msrb.mxu1 %v1549_v33 }
 0x42d   :  { %1741 = vmatpush.msra.mxu0 %v1730_v27  ;;  %1638 = vmatpush.msrb.mxu1 %v1545_v15 }
 0x42f   :  { %1742 = vmatpush.msra.mxu0 %v1729_v43  ;;  %1639 = vmatpush.msrb.mxu1 %v1541_v45 }
 0x431   :  { %1743 = vmatpush.msra.mxu0 %v1728_v19  ;;  %v3801_v19 = vld [vmem:[#allocation38_spill] sm:$0xff] }
 0x433   :  { %1744 = vmatpush.msra.mxu0 %v1727_v34 }
 0x435   :  { %1745 = vmatpush.msra.mxu0 %v1726_v44 }
 0x437   :  { %1746 = vmatpush.msra.mxu0 %v1725_v31 }
 0x439   :  { %1747 = vmatpush.msra.mxu0 %v1724_v63 }
 0x43b   :  { %1748 = vmatpush.msra.mxu0 %v1723_v57 }
 0x43d   :  { %1749 = vmatpush.msra.mxu0 %v1722_v32 }
 0x43f   :  { %1750 = vmatpush.msra.mxu0 %v1721_v18 }
 0x441   :  { %1751 = vmatpush.msra.mxu0 %v1720_v35 }
 0x443   :  { %1752 = vmatpush.msra.mxu0 %v1719_v52 }
 0x445   :  { %1753 = vmatpush.msra.mxu0 %v1718_v23 }
 0x4a2   :  { %v1446_v38 = vpop.f32.mrf.mxu0  ;;  %v1466_v51 = vpop.f32.mrf.mxu1 }
 0x4a3   :  { %v1509_v39 = vadd.f32 %v1446_v38, %v3796_v10  ;;  %v1510_v50 = vadd.f32 %v1466_v51, %v3797_v28 }
 0x4a5   :  { %v1513_v59 = vmul.f32 0.5, %v1509_v39  ;;  %v1517_v60 = vmul.f32 0.5, %v1510_v50 }
 0x4a7   :  { %1876 = vtanh.f32 %v1513_v59 }
 0x4a8   :  { %1878 = vtanh.f32 %v1517_v60 }
 0x4a9   :  { %v1486_v0 = vpop.f32.mrf.mxu2  ;;  %v1506_v61 = vpop.f32.mrf.mxu3 }
 0x4aa   :  { %v1511_v9 = vadd.f32 %v1486_v0, %v3798_v3  ;;  %v1512_v2 = vadd.f32 %v1506_v61, %v3799_v12 }
 0x4ac   :  { %1880 = vtanh.f32 %v1511_v9  ;;  %v1522_v53 = vmul.f32 0.5, %v1512_v2 }
 0x4ad   :  { %v1877_v6 = vpop.eup %1876 }
 0x4ae   :  { %v1879_v8 = vpop.eup %1878  ;;  %v1515_v21 = vmul.f32 0.5, %v1877_v6  ;;  %1882 = vtanh.f32 %v1522_v53 }
 0x4af   :  { %v1519_v24 = vmul.f32 0.5, %v1879_v8 }
 0x4b0   :  { %v1516_v41 = vadd.f32 0.5, %v1515_v21 }
 0x4b1   :  { %v1520_v42 = vadd.f32 0.5, %v1519_v24 }
 0x4b2   :  { %v1881_v48 = vpop.eup %1880 }
 0x4b3   :  { %v1526_v58 = vmul.f32 %v1520_v42, %v3472_v13  ;;  %v1527_v27 = vmul.f32 %v1881_v48, %v1516_v41 }
 0x4b4   :  { %v1883_v5 = vpop.eup %1882 }
 0x4b5   :  { %v1528_v20 = vadd.f32 %v1527_v27, %v1526_v58  ;;  %v1524_v56 = vmul.f32 0.5, %v1883_v5 }
 0x4b7   :  { %1884 = vtanh.f32 %v1528_v20  ;;  %v1525_v43 = vadd.f32 0.5, %v1524_v56 }
 0x4bd   :  { %v1885_v49 = vpop.eup %1884 }
 0x4be   :  { %v1530_v62 = vmul.f32 %v1885_v49, %v1525_v43 }
 0x4c0   :  { %1620 = vmatmul.f32.vlgmr.msrb.gmra.mxu0 %v1530_v62  ;;  %1640 = vmatmul.f32.vlgmr.msrb.gmra.mxu1 %v1530_v62 }
 0x4c1   :  { %1660 = vmatmul.f32.vlgmr.msrb.gmra.mxu2 %v1530_v62  ;;  %1680 = vmatmul.f32.vlgmr.msra.gmra.mxu3 %v1530_v62 }
 0x4c8   :  { %1754 = vmatmul.f32.vlgmr.msra.gmra.mxu0 %v3800_v14 }
 0x4d0   :  { %1757 = vmatmul.f32.gmra.mxu0 %v3801_v19 }
 0x4d8   :  { %1760 = vmatmul.f32.gmra.mxu0 %v3802_v22 }
 0x4e0   :  { %1763 = vmatmul.f32.gmra.mxu0 %v3344_v26 }
 0x4e8   :  { %1766 = vmatmul.f32.gmra.mxu0 %v3412_v16  ;;  %v3805_v16 = vld [vmem:[#allocation25_spill] sm:$0xff] }
 0x4f0   :  { %1769 = vmatmul.f32.gmra.mxu0 %v3475_v25  ;;  %v3806_v25 = vld [vmem:[#allocation17_spill] sm:$0xff] }
 0x4f8   :  { %1772 = vmatmul.f32.gmra.mxu0 %v1530_v62 }
 0x53d   :  { %v1621_v13 = vpop.f32.mrf.mxu0  ;;  %v1641_v17 = vpop.f32.mrf.mxu1 }
 0x53e   :  { %v1684_v34 = vadd.f32 %v1621_v13, %v3803_v54  ;;  %v1685_v36 = vadd.f32 %v1641_v17, %v3804_v11 }
 0x540   :  { %v1688_v30 = vmul.f32 0.5, %v1684_v34  ;;  %v1692_v44 = vmul.f32 0.5, %v1685_v36 }
 0x542   :  { %1886 = vtanh.f32 %v1688_v30 }
 0x543   :  { %1888 = vtanh.f32 %v1692_v44 }
 0x544   :  { %v1661_v26 = vpop.f32.mrf.mxu2  ;;  %v1681_v55 = vpop.f32.mrf.mxu3 }
 0x545   :  { %v1686_v1 = vadd.f32 %v1661_v26, %v3805_v16  ;;  %v1687_v31 = vadd.f32 %v1681_v55, %v3806_v25  ;;  %v1755_v33 = vpop.f32.mrf.mxu0 }
 0x546   :  { %v1756_v37 = vadd.f32 %v1815_v46, %v1755_v33 }
 0x547   :  { %1890 = vtanh.f32 %v1686_v1  ;;  %v1697_v40 = vmul.f32 0.5, %v1687_v31 }
 0x548   :  { %v1887_v63 = vpop.eup %1886  ;;  %1779 = vst [vmem:[%s3712_s6] sm:$0xff] %v1756_v37 }
 0x549   :  { %v1889_v15 = vpop.eup %1888  ;;  %v1690_v47 = vmul.f32 0.5, %v1887_v63  ;;  %1892 = vtanh.f32 %v1697_v40 }
 0x54a   :  { %v1694_v4 = vmul.f32 0.5, %v1889_v15 }
 0x54b   :  { %v1691_v57 = vadd.f32 0.5, %v1690_v47 }
 0x54c   :  { %v1695_v45 = vadd.f32 0.5, %v1694_v4 }
 0x54d   :  { %v1891_v7 = vpop.eup %1890  ;;  %v1758_v29 = vpop.f32.mrf.mxu0 }
 0x54e   :  { %v1701_v32 = vmul.f32 %v1695_v45, %v1528_v20  ;;  %v1702_v18 = vmul.f32 %v1891_v7, %v1691_v57  ;;  %v1759_v35 = vadd.f32 %v1815_v46, %v1758_v29 }
 0x54f   :  { %v1893_v38 = vpop.eup %1892 }
 0x550   :  { %1780 = vst [vmem:[%s3712_s6 + $0x8] sm:$0xff] %v1759_v35  ;;  %v1703_v51 = vadd.f32 %v1702_v18, %v1701_v32  ;;  %v1699_v10 = vmul.f32 0.5, %v1893_v38 }
 0x552   :  { %1894 = vtanh.f32 %v1703_v51  ;;  %v1700_v50 = vadd.f32 0.5, %v1699_v10 }
 0x555   :  { %v1761_v39 = vpop.f32.mrf.mxu0 }
 0x556   :  { %v1762_v28 = vadd.f32 %v1815_v46, %v1761_v39 }
 0x558   :  { %v1895_v52 = vpop.eup %1894  ;;  %1781 = vst [vmem:[%s3712_s6 + $0x10] sm:$0xff] %v1762_v28 }
 0x559   :  { %v1705_v59 = vmul.f32 %v1895_v52, %v1700_v50 }
 0x55b   :  { %1775 = vmatmul.f32.gmra.mxu0 %v1705_v59 }
 0x55d   :  { %v1764_v60 = vpop.f32.mrf.mxu0 }
 0x55e   :  { %v1765_v23 = vadd.f32 %v1815_v46, %v1764_v60 }
 0x560   :  { %1782 = vst [vmem:[%s3712_s6 + $0x18] sm:$0xff] %v1765_v23 }
 0x565   :  { %v1767_v0 = vpop.f32.mrf.mxu0 }
 0x566   :  { %v1768_v61 = vadd.f32 %v1815_v46, %v1767_v0 }
 0x568   :  { %1783 = vst [vmem:[%s3712_s6 + $0x20] sm:$0xff] %v1768_v61 }
 0x56d   :  { %v1770_v3 = vpop.f32.mrf.mxu0 }
 0x56e   :  { %v1771_v9 = vadd.f32 %v1815_v46, %v1770_v3 }
 0x570   :  { %1784 = vst [vmem:[%s3712_s6 + $0x28] sm:$0xff] %v1771_v9 }
 0x575   :  { %v1773_v12 = vpop.f32.mrf.mxu0 }
 0x576   :  { %v1774_v2 = vadd.f32 %v1815_v46, %v1773_v12 }
 0x578   :  { %1785 = vst [vmem:[%s3712_s6 + $0x30] sm:$0xff] %v1774_v2 }
 0x5d8   :  { %v1776_v53 = vpop.f32.mrf.mxu0 }
 0x5d9   :  { %v1777_v6 = vadd.f32 %v1815_v46, %v1776_v53 }
 0x5db   :  { %1786 = vst [vmem:[%s3712_s6 + $0x38] sm:$0xff] %v1777_v6 }

</bundles_post_ra>
